<compile_context>
chip_gen: v7x
topology: tpu7x:2x2x1
jax: 0.10.0
libtpu: 0.0.40
codegen_flags: <defaults>
</compile_context>

<pallas_src>
import functools

import jax
import jax.numpy as jnp
from jax.experimental import pallas as pl
from jax.experimental.pallas import tpu as pltpu


# ---------------------------------------------------------------------------
# The single fused encoder kernel
# ---------------------------------------------------------------------------

def _encoder_kernel(x_ref, wxf_ref, wxb_ref, bx_ref, whh_ref,
                    reg_ref, sp_ref, trows_ref, w1_ref, w2_ref,
                    frame_ref, i3d_ref, obj_ref, *, batch, frames, hidden):
    """Fused Encoder.forward.

    x_ref     : (B*T, a+m)   raw CNN features, row order (b, t)
    wxf_ref   : (a+m, 16H)   folded embed+input proj, forward directions
    wxb_ref   : (a+m, 16H)   folded embed+input proj, backward directions
    bx_ref    : (1, 16H)     folded input biases (all 4 directions)
    whh_ref   : (4H, 16H)    block-diagonal recurrent weights, 4 directions
    reg_ref   : (B*T*18, region_feature_size)
    sp_ref    : (B*T*18, spatial_feature_size)
    trows_ref : (T*18, Dobj) folded time/bias table (batch invariant)
    w1_ref    : (region_feature_size, Dobj)   region_embed @ visual_embed
    w2_ref    : (spatial_feature_size, Dobj)  spatial_embed @ visual_embed
    frame_ref : (B*T, 2H)    bi_lstm1 output, [fwd | bwd]
    i3d_ref   : (B*T, 2H)    bi_lstm2 output, [fwd | bwd]
    obj_ref   : (B*T*18, Dobj)

    Lane layout of the fused recurrence (G = 4H): gate blocks [i|f|g|o] of
    width G, and inside each gate the direction order
    [lstm1_fwd | lstm2_fwd | lstm1_bwd | lstm2_bwd], matching the fused
    hidden/cell state (B, G).
    """
    B, T, H = batch, frames, hidden
    G = 4 * H
    f32 = jnp.float32

    # ---------------- object branch: tanh(reg@W1 + sp@W2 + trows) ----------
    y = (jnp.dot(reg_ref[...], w1_ref[...], preferred_element_type=f32)
         + jnp.dot(sp_ref[...], w2_ref[...], preferred_element_type=f32))
    trows = trows_ref[...]
    obj_ref[...] = jnp.tanh(y + jnp.concatenate([trows] * B, axis=0))

    # ------------- LSTM input projections, hoisted out of the recurrence ----
    x2 = x_ref[...]                                            # (B*T, a+m)
    pre_f = jnp.dot(x2, wxf_ref[...], preferred_element_type=f32) + bx_ref[...]
    pre_b = jnp.dot(x2, wxb_ref[...], preferred_element_type=f32)

    def rows_at(pre, t):       # gather the B rows of time t (row order (b, t))
        return jnp.concatenate(
            [pre[b * T + t:b * T + t + 1] for b in range(B)], axis=0)

    # Per-step input slabs: forward half at time t, backward half at T-1-t.
    pin = [rows_at(pre_f, t) + rows_at(pre_b, T - 1 - t) for t in range(T)]

    # ------------- 4-direction recurrence, one MXU matmul per step ----------
    whh = whh_ref[...]
    h = jnp.zeros((B, G), f32)
    c = jnp.zeros((B, G), f32)
    hs = []
    for t in range(T):                                   # fully unrolled (T=8)
        z = pin[t] + jnp.dot(h, whh, preferred_element_type=f32)   # (B, 4G)
        i_g = jax.nn.sigmoid(z[:, 0 * G:1 * G])
        f_g = jax.nn.sigmoid(z[:, 1 * G:2 * G])
        g_g = jnp.tanh(z[:, 2 * G:3 * G])
        o_g = jax.nn.sigmoid(z[:, 3 * G:4 * G])
        c = f_g * c + i_g * g_g
        h = o_g * jnp.tanh(c)
        hs.append(h)

    # ------------- emit outputs in final [fwd | bwd] layout ------------------
    # frame (lstm1): fwd lanes [0:H], bwd lanes [2H:3H]; the bwd hidden for
    # output time t was produced at step T-1-t.  i3d (lstm2): [H:2H]/[3H:4H].
    fr_rows = [jnp.concatenate([hs[t][:, 0:H],
                                hs[T - 1 - t][:, 2 * H:3 * H]], axis=-1)
               for t in range(T)]                         # (B, 2H) per t
    i3_rows = [jnp.concatenate([hs[t][:, H:2 * H],
                                hs[T - 1 - t][:, 3 * H:4 * H]], axis=-1)
               for t in range(T)]
    frame_ref[...] = jnp.concatenate(
        [fr_rows[t][b:b + 1] for b in range(B) for t in range(T)], axis=0)
    i3d_ref[...] = jnp.concatenate(
        [i3_rows[t][b:b + 1] for b in range(B) for t in range(T)], axis=0)


def encoder_pallas(fused, cnn2d, reg2d, sp2d, *, batch, frames, hidden, nb,
                   obj_dim):
    B, T, H = batch, frames, hidden
    kernel = functools.partial(_encoder_kernel, batch=B, frames=T, hidden=H)

    def vmem():
        return pl.BlockSpec(memory_space=pltpu.MemorySpace.VMEM)

    return pl.pallas_call(
        kernel,
        out_shape=(jax.ShapeDtypeStruct((B * T, 2 * H), jnp.float32),
                   jax.ShapeDtypeStruct((B * T, 2 * H), jnp.float32),
                   jax.ShapeDtypeStruct((B * T * nb, obj_dim), jnp.float32)),
        in_specs=[vmem() for _ in range(10)],
        out_specs=(vmem(), vmem(), vmem()),
    )(cnn2d, fused["wxf"], fused["wxb"], fused["bx"], fused["whh"],
      reg2d, sp2d, fused["trows"], fused["w1"], fused["w2"])


# ---------------------------------------------------------------------------
# Parameter construction (deterministic, synthetic) + fusion prep
# ---------------------------------------------------------------------------

def xavier_normal(key, fan_in, fan_out):
    std = (2.0 / (fan_in + fan_out)) ** 0.5
    return std * jax.random.normal(key, (fan_in, fan_out), jnp.float32)


def make_params(key, cfg):
    keys = jax.random.split(key, 24)
    k = iter(keys)
    P, H = cfg["frame_projected_size"], cfg["hidden_size"]

    def lstm_dir_params(kw1, kw2, kb):
        w_ih = 0.1 * jax.random.normal(kw1, (P, 4 * H), jnp.float32)
        w_hh = 0.1 * jax.random.normal(kw2, (H, 4 * H), jnp.float32)
        # TODO(synk): for a real PyTorch checkpoint this is b_ih + b_hh folded.
        b = 0.1 * jax.random.normal(kb, (4 * H,), jnp.float32)
        return w_ih, w_hh, b

    params = {}
    params["frame_embed_w"] = xavier_normal(next(k), cfg["a_feature_size"], P)
    params["frame_embed_b"] = 0.1 * jax.random.normal(next(k), (P,), jnp.float32)
    params["i3d_embed_w"] = xavier_normal(next(k), cfg["m_feature_size"], P)
    params["i3d_embed_b"] = 0.1 * jax.random.normal(next(k), (P,), jnp.float32)

    params["lstm1"] = lstm_dir_params(next(k), next(k), next(k)) + \
                      lstm_dir_params(next(k), next(k), next(k))
    params["lstm2"] = lstm_dir_params(next(k), next(k), next(k)) + \
                      lstm_dir_params(next(k), next(k), next(k))

    rps, sps = cfg["region_projected_size"], cfg["spatial_projected_size"]
    params["region_embed_w"] = xavier_normal(next(k),
                                             cfg["region_feature_size"], rps)
    params["region_embed_b"] = 0.1 * jax.random.normal(next(k), (rps,), jnp.float32)
    params["spatial_embed_w"] = xavier_normal(next(k),
                                              cfg["spatial_feature_size"], sps)
    params["spatial_embed_b"] = 0.1 * jax.random.normal(next(k), (sps,), jnp.float32)
    params["time_feats"] = jax.random.normal(
        next(k), (cfg["max_frames"], cfg["time_size"]), jnp.float32)
    vis_in = rps + sps + cfg["time_size"]
    params["visual_embed_w"] = xavier_normal(next(k), vis_in,
                                             cfg["object_projected_size"])
    params["visual_embed_b"] = 0.1 * jax.random.normal(
        next(k), (cfg["object_projected_size"],), jnp.float32)
    return params


def prepare_fused(params, cfg, *, num_boxes_kept=18):
    """Pre-fold every linear chain consumed by the kernel (done once)."""
    a, m = cfg["a_feature_size"], cfg["m_feature_size"]
    H = cfg["hidden_size"]
    F = a + m
    G = 4 * H                 # one gate block spans all 4 directions

    # Direction order (inside every gate block and inside the fused hidden):
    #   0 = lstm1 fwd (frame), 1 = lstm2 fwd (i3d), 2 = lstm1 bwd, 3 = lstm2 bwd
    l1, l2 = params["lstm1"], params["lstm2"]
    dirs = [
        (l1[0], l1[1], l1[2], params["frame_embed_w"], params["frame_embed_b"], 0, 0),
        (l2[0], l2[1], l2[2], params["i3d_embed_w"], params["i3d_embed_b"], a, 1),
        (l1[3], l1[4], l1[5], params["frame_embed_w"], params["frame_embed_b"], 0, 2),
        (l2[3], l2[4], l2[5], params["i3d_embed_w"], params["i3d_embed_b"], a, 3),
    ]
    wxf = jnp.zeros((F, 4 * G), jnp.float32)
    wxb = jnp.zeros((F, 4 * G), jnp.float32)
    bx = jnp.zeros((4 * G,), jnp.float32)
    whh = jnp.zeros((4 * H, 4 * G), jnp.float32)
    for w_ih, w_hh, b, emb_w, emb_b, row0, d in dirs:
        wx_eff = emb_w @ w_ih            # fold frame/i3d embed into input proj
        bx_eff = emb_b @ w_ih + b
        rows = emb_w.shape[0]
        for g in range(4):               # PyTorch gate order: i, f, g, o
            col = g * G + d * H
            blk = wx_eff[:, g * H:(g + 1) * H]
            if d < 2:
                wxf = wxf.at[row0:row0 + rows, col:col + H].set(blk)
            else:
                wxb = wxb.at[row0:row0 + rows, col:col + H].set(blk)
            bx = bx.at[col:col + H].set(bx_eff[g * H:(g + 1) * H])
            whh = whh.at[d * H:(d + 1) * H, col:col + H].set(
                w_hh[:, g * H:(g + 1) * H])

    # Object branch: region/spatial/visual Linears and the time bias are a
    # pure linear chain (no activation/dropout in between) -> pre-multiply.
    rps, sps = cfg["region_projected_size"], cfg["spatial_projected_size"]
    wv = params["visual_embed_w"]
    w1 = params["region_embed_w"] @ wv[:rps]
    w2 = params["spatial_embed_w"] @ wv[rps:rps + sps]
    bias = (params["region_embed_b"] @ wv[:rps]
            + params["spatial_embed_b"] @ wv[rps:rps + sps]
            + params["visual_embed_b"])
    time_bias = params["time_feats"] @ wv[rps + sps:]              # (T, Dobj)
    trows = jnp.repeat(time_bias, num_boxes_kept, axis=0) + bias   # (T*nb, Dobj)

    return dict(wxf=wxf, wxb=wxb, bx=bx.reshape(1, -1), whh=whh,
                w1=w1, w2=w2, trows=trows)


# ---------------------------------------------------------------------------
# Encoder forward (wrapper does only free, row-major reshapes)
# ---------------------------------------------------------------------------

def encoder_forward(fused, cnn_feats, region_feats, spatial_feats, *, cfg):
    a, m = cfg["a_feature_size"], cfg["m_feature_size"]
    H = cfg["hidden_size"]
    B, T, F = cnn_feats.shape
    assert F == a + m
    nb = min(region_feats.shape[2], 18)   # reference keeps the first 18 boxes
    obj_dim = cfg["object_projected_size"]
    assert fused["trows"].shape[0] == T * nb

    cnn2d = cnn_feats.reshape(B * T, F)
    reg2d = region_feats[:, :, :nb, :].reshape(B * T * nb, -1)
    sp2d = spatial_feats[:, :, :nb, :].reshape(B * T * nb, -1)

    frame2d, i3d2d, obj2d = encoder_pallas(
        fused, cnn2d, reg2d, sp2d,
        batch=B, frames=T, hidden=H, nb=nb, obj_dim=obj_dim)
    return (frame2d.reshape(B, T, 2 * H),
            i3d2d.reshape(B, T, 2 * H),
            obj2d.reshape(B, T, nb, obj_dim))


# ---------------------------------------------------------------------------
# Pure-JAX reference of the PyTorch Encoder (un-fused), for verification
# ---------------------------------------------------------------------------

def encoder_reference(params, cnn_feats, region_feats, spatial_feats, cfg):
    a = cfg["a_feature_size"]
    H = cfg["hidden_size"]
    B, T, _ = cnn_feats.shape

    def run_dir(x, w_ih, w_hh, b, reverse):
        h = jnp.zeros((B, H), jnp.float32)
        c = jnp.zeros((B, H), jnp.float32)
        outs = [None] * T
        steps = range(T - 1, -1, -1) if reverse else range(T)
        for t in steps:
            z = x[:, t] @ w_ih + h @ w_hh + b
            i = jax.nn.sigmoid(z[:, 0:H])
            f = jax.nn.sigmoid(z[:, H:2 * H])
            g = jnp.tanh(z[:, 2 * H:3 * H])
            o = jax.nn.sigmoid(z[:, 3 * H:4 * H])
            c = f * c + i * g
            h = o * jnp.tanh(c)
            outs[t] = h
        return jnp.stack(outs, axis=1)                     # (B, T, H)

    def bilstm(x, lp):
        return jnp.concatenate([run_dir(x, lp[0], lp[1], lp[2], False),
                                run_dir(x, lp[3], lp[4], lp[5], True)], axis=-1)

    emb_f = cnn_feats[:, :, :a] @ params["frame_embed_w"] + params["frame_embed_b"]
    emb_i = cnn_feats[:, :, a:] @ params["i3d_embed_w"] + params["i3d_embed_b"]
    frame_out = bilstm(emb_f, params["lstm1"])
    i3d_out = bilstm(emb_i, params["lstm2"])

    nb = min(region_feats.shape[2], 18)
    reg = region_feats[:, :, :nb] @ params["region_embed_w"] + params["region_embed_b"]
    sp = spatial_feats[:, :, :nb] @ params["spatial_embed_w"] + params["spatial_embed_b"]
    ts = params["time_feats"].shape[-1]
    tfe = jnp.broadcast_to(params["time_feats"][None, :, None, :], (B, T, nb, ts))
    obj = jnp.tanh(jnp.concatenate([reg, sp, tfe], axis=-1)
                   @ params["visual_embed_w"] + params["visual_embed_b"])
    return frame_out, i3d_out, obj


# ---------------------------------------------------------------------------
# Main
# ---------------------------------------------------------------------------

if __name__ == "__main__":
    cfg = dict(
        a_feature_size=32,
        m_feature_size=32,
        frame_projected_size=32,
        hidden_size=16,
        max_frames=8,
        region_feature_size=24,
        region_projected_size=16,
        spatial_feature_size=8,
        spatial_projected_size=8,
        time_size=8,
        object_projected_size=32,
    )
    B, T, NB = 2, cfg["max_frames"], 20

    root = jax.random.PRNGKey(0)
    k_par, k_cnn, k_reg, k_sp = jax.random.split(root, 4)
    params = make_params(k_par, cfg)
    fused = prepare_fused(params, cfg, num_boxes_kept=18)

    cnn_feats = jax.random.normal(
        k_cnn, (B, T, cfg["a_feature_size"] + cfg["m_feature_size"]), jnp.float32)
    region_feats = jax.random.normal(
        k_reg, (B, T, NB, cfg["region_feature_size"]), jnp.float32)
    spatial_feats = jax.random.normal(
        k_sp, (B, T, NB, cfg["spatial_feature_size"]), jnp.float32)

    forward = jax.jit(functools.partial(encoder_forward, cfg=cfg))
    frame_out, i3d_out, object_feats = forward(
        fused, cnn_feats, region_feats, spatial_feats)
    jax.block_until_ready((frame_out, i3d_out, object_feats))

    assert frame_out.shape == (B, T, 2 * cfg["hidden_size"])
    assert i3d_out.shape == (B, T, 2 * cfg["hidden_size"])
    assert object_feats.shape == (B, T, 18, cfg["object_projected_size"])

    # Verify against the un-fused pure-JAX reference of the PyTorch math.
    ref_frame, ref_i3d, ref_obj = encoder_reference(
        params, cnn_feats, region_feats, spatial_feats, cfg)
    for got, want, name in ((frame_out, ref_frame, "frame"),
                            (i3d_out, ref_i3d, "i3d"),
                            (object_feats, ref_obj, "object")):
        err = float(jnp.max(jnp.abs(got - want)))
        assert err < 2e-3, f"{name} mismatch: max abs err {err}"

    print("KERNEL_OK")
</pallas_src>

<mosaic_0001>
module attributes {stable_mosaic.version = 11 : i64} {
  func.func @_encoder_kernel(%arg0: memref<16x64xf32, #tpu.memory_space<vmem>>, %arg1: memref<64x256xf32, #tpu.memory_space<vmem>>, %arg2: memref<64x256xf32, #tpu.memory_space<vmem>>, %arg3: memref<1x256xf32, #tpu.memory_space<vmem>>, %arg4: memref<64x256xf32, #tpu.memory_space<vmem>>, %arg5: memref<288x24xf32, #tpu.memory_space<vmem>>, %arg6: memref<288x8xf32, #tpu.memory_space<vmem>>, %arg7: memref<144x32xf32, #tpu.memory_space<vmem>>, %arg8: memref<24x32xf32, #tpu.memory_space<vmem>>, %arg9: memref<8x32xf32, #tpu.memory_space<vmem>>, %arg10: memref<16x32xf32, #tpu.memory_space<vmem>>, %arg11: memref<16x32xf32, #tpu.memory_space<vmem>>, %arg12: memref<288x32xf32, #tpu.memory_space<vmem>>) attributes {dimension_semantics = [], scalar_prefetch = 0 : i64, scratch_operands = 0 : i64, tpu.core_type = #tpu.core_type<tc>} {
    %c0 = arith.constant 0 : index
    %c0_0 = arith.constant 0 : index
    %0 = vector.load %arg5[%c0, %c0_0] : memref<288x24xf32, #tpu.memory_space<vmem>>, vector<288x24xf32>
    %c0_1 = arith.constant 0 : index
    %c0_2 = arith.constant 0 : index
    %1 = vector.load %arg8[%c0_1, %c0_2] : memref<24x32xf32, #tpu.memory_space<vmem>>, vector<24x32xf32>
    %cst = arith.constant dense<0.000000e+00> : vector<288x32xf32>
    %2 = tpu.matmul %0, %1, %cst {dimension_numbers = #tpu.dot_dimension_numbers<[1], [0], [0], [1], [0, 0, 1, 1], [], []>} : vector<288x24xf32>, vector<24x32xf32>, vector<288x32xf32> -> vector<288x32xf32>
    %c0_3 = arith.constant 0 : index
    %c0_4 = arith.constant 0 : index
    %3 = vector.load %arg6[%c0_3, %c0_4] : memref<288x8xf32, #tpu.memory_space<vmem>>, vector<288x8xf32>
    %c0_5 = arith.constant 0 : index
    %c0_6 = arith.constant 0 : index
    %4 = vector.load %arg9[%c0_5, %c0_6] : memref<8x32xf32, #tpu.memory_space<vmem>>, vector<8x32xf32>
    %cst_7 = arith.constant dense<0.000000e+00> : vector<288x32xf32>
    %5 = tpu.matmul %3, %4, %cst_7 {dimension_numbers = #tpu.dot_dimension_numbers<[1], [0], [0], [1], [0, 0, 1, 1], [], []>} : vector<288x8xf32>, vector<8x32xf32>, vector<288x32xf32> -> vector<288x32xf32>
    %6 = arith.addf %2, %5 : vector<288x32xf32>
    %c0_8 = arith.constant 0 : index
    %c0_9 = arith.constant 0 : index
    %7 = vector.load %arg7[%c0_8, %c0_9] : memref<144x32xf32, #tpu.memory_space<vmem>>, vector<144x32xf32>
    %8 = tpu.concatenate %7, %7 in 0 : vector<144x32xf32>, vector<144x32xf32> -> vector<288x32xf32>
    %9 = arith.addf %6, %8 : vector<288x32xf32>
    %10 = math.tanh %9 : vector<288x32xf32>
    %c0_10 = arith.constant 0 : index
    %c0_11 = arith.constant 0 : index
    %11 = vector.load %arg12[%c0_10, %c0_11] : memref<288x32xf32, #tpu.memory_space<vmem>>, vector<288x32xf32>
    tpu.vector_store %arg12[%c0_10, %c0_11], %10 {strides = array<i32>} : memref<288x32xf32, #tpu.memory_space<vmem>>, vector<288x32xf32>,
    %c0_12 = arith.constant 0 : index
    %c0_13 = arith.constant 0 : index
    %12 = vector.load %arg0[%c0_12, %c0_13] : memref<16x64xf32, #tpu.memory_space<vmem>>, vector<16x64xf32>
    %c0_14 = arith.constant 0 : index
    %c0_15 = arith.constant 0 : index
    %13 = vector.load %arg1[%c0_14, %c0_15] : memref<64x256xf32, #tpu.memory_space<vmem>>, vector<64x256xf32>
    %cst_16 = arith.constant dense<0.000000e+00> : vector<16x256xf32>
    %14 = tpu.matmul %12, %13, %cst_16 {dimension_numbers = #tpu.dot_dimension_numbers<[1], [0], [0], [1], [0, 0, 1, 1], [], []>} : vector<16x64xf32>, vector<64x256xf32>, vector<16x256xf32> -> vector<16x256xf32>
    %c0_17 = arith.constant 0 : index
    %c0_18 = arith.constant 0 : index
    %15 = vector.load %arg3[%c0_17, %c0_18] : memref<1x256xf32, #tpu.memory_space<vmem>>, vector<1x256xf32>
    %16 = vector.broadcast %15 : vector<1x256xf32> to vector<16x256xf32>
    %17 = arith.addf %14, %16 : vector<16x256xf32>
    %c0_19 = arith.constant 0 : index
    %c0_20 = arith.constant 0 : index
    %18 = vector.load %arg2[%c0_19, %c0_20] : memref<64x256xf32, #tpu.memory_space<vmem>>, vector<64x256xf32>
    %cst_21 = arith.constant dense<0.000000e+00> : vector<16x256xf32>
    %19 = tpu.matmul %12, %18, %cst_21 {dimension_numbers = #tpu.dot_dimension_numbers<[1], [0], [0], [1], [0, 0, 1, 1], [], []>} : vector<16x64xf32>, vector<64x256xf32>, vector<16x256xf32> -> vector<16x256xf32>
    %20 = vector.extract_strided_slice %17 {offsets = [0, 0], sizes = [1, 256], strides = [1, 1]} : vector<16x256xf32> to vector<1x256xf32>
    %21 = vector.extract_strided_slice %17 {offsets = [8, 0], sizes = [1, 256], strides = [1, 1]} : vector<16x256xf32> to vector<1x256xf32>
    %22 = tpu.concatenate %20, %21 in 0 : vector<1x256xf32>, vector<1x256xf32> -> vector<2x256xf32>
    %23 = vector.extract_strided_slice %19 {offsets = [7, 0], sizes = [1, 256], strides = [1, 1]} : vector<16x256xf32> to vector<1x256xf32>
    %24 = vector.extract_strided_slice %19 {offsets = [15, 0], sizes = [1, 256], strides = [1, 1]} : vector<16x256xf32> to vector<1x256xf32>
    %25 = tpu.concatenate %23, %24 in 0 : vector<1x256xf32>, vector<1x256xf32> -> vector<2x256xf32>
    %26 = arith.addf %22, %25 : vector<2x256xf32>
    %27 = vector.extract_strided_slice %17 {offsets = [1, 0], sizes = [1, 256], strides = [1, 1]} : vector<16x256xf32> to vector<1x256xf32>
    %28 = vector.extract_strided_slice %17 {offsets = [9, 0], sizes = [1, 256], strides = [1, 1]} : vector<16x256xf32> to vector<1x256xf32>
    %29 = tpu.concatenate %27, %28 in 0 : vector<1x256xf32>, vector<1x256xf32> -> vector<2x256xf32>
    %30 = vector.extract_strided_slice %19 {offsets = [6, 0], sizes = [1, 256], strides = [1, 1]} : vector<16x256xf32> to vector<1x256xf32>
    %31 = vector.extract_strided_slice %19 {offsets = [14, 0], sizes = [1, 256], strides = [1, 1]} : vector<16x256xf32> to vector<1x256xf32>
    %32 = tpu.concatenate %30, %31 in 0 : vector<1x256xf32>, vector<1x256xf32> -> vector<2x256xf32>
    %33 = arith.addf %29, %32 : vector<2x256xf32>
    %34 = vector.extract_strided_slice %17 {offsets = [2, 0], sizes = [1, 256], strides = [1, 1]} : vector<16x256xf32> to vector<1x256xf32>
    %35 = vector.extract_strided_slice %17 {offsets = [10, 0], sizes = [1, 256], strides = [1, 1]} : vector<16x256xf32> to vector<1x256xf32>
    %36 = tpu.concatenate %34, %35 in 0 : vector<1x256xf32>, vector<1x256xf32> -> vector<2x256xf32>
    %37 = vector.extract_strided_slice %19 {offsets = [5, 0], sizes = [1, 256], strides = [1, 1]} : vector<16x256xf32> to vector<1x256xf32>
    %38 = vector.extract_strided_slice %19 {offsets = [13, 0], sizes = [1, 256], strides = [1, 1]} : vector<16x256xf32> to vector<1x256xf32>
    %39 = tpu.concatenate %37, %38 in 0 : vector<1x256xf32>, vector<1x256xf32> -> vector<2x256xf32>
    %40 = arith.addf %36, %39 : vector<2x256xf32>
    %41 = vector.extract_strided_slice %17 {offsets = [3, 0], sizes = [1, 256], strides = [1, 1]} : vector<16x256xf32> to vector<1x256xf32>
    %42 = vector.extract_strided_slice %17 {offsets = [11, 0], sizes = [1, 256], strides = [1, 1]} : vector<16x256xf32> to vector<1x256xf32>
    %43 = tpu.concatenate %41, %42 in 0 : vector<1x256xf32>, vector<1x256xf32> -> vector<2x256xf32>
    %44 = vector.extract_strided_slice %19 {offsets = [4, 0], sizes = [1, 256], strides = [1, 1]} : vector<16x256xf32> to vector<1x256xf32>
    %45 = vector.extract_strided_slice %19 {offsets = [12, 0], sizes = [1, 256], strides = [1, 1]} : vector<16x256xf32> to vector<1x256xf32>
    %46 = tpu.concatenate %44, %45 in 0 : vector<1x256xf32>, vector<1x256xf32> -> vector<2x256xf32>
    %47 = arith.addf %43, %46 : vector<2x256xf32>
    %48 = vector.extract_strided_slice %17 {offsets = [4, 0], sizes = [1, 256], strides = [1, 1]} : vector<16x256xf32> to vector<1x256xf32>
    %49 = vector.extract_strided_slice %17 {offsets = [12, 0], sizes = [1, 256], strides = [1, 1]} : vector<16x256xf32> to vector<1x256xf32>
    %50 = tpu.concatenate %48, %49 in 0 : vector<1x256xf32>, vector<1x256xf32> -> vector<2x256xf32>
    %51 = vector.extract_strided_slice %19 {offsets = [3, 0], sizes = [1, 256], strides = [1, 1]} : vector<16x256xf32> to vector<1x256xf32>
    %52 = vector.extract_strided_slice %19 {offsets = [11, 0], sizes = [1, 256], strides = [1, 1]} : vector<16x256xf32> to vector<1x256xf32>
    %53 = tpu.concatenate %51, %52 in 0 : vector<1x256xf32>, vector<1x256xf32> -> vector<2x256xf32>
    %54 = arith.addf %50, %53 : vector<2x256xf32>
    %55 = vector.extract_strided_slice %17 {offsets = [5, 0], sizes = [1, 256], strides = [1, 1]} : vector<16x256xf32> to vector<1x256xf32>
    %56 = vector.extract_strided_slice %17 {offsets = [13, 0], sizes = [1, 256], strides = [1, 1]} : vector<16x256xf32> to vector<1x256xf32>
    %57 = tpu.concatenate %55, %56 in 0 : vector<1x256xf32>, vector<1x256xf32> -> vector<2x256xf32>
    %58 = vector.extract_strided_slice %19 {offsets = [2, 0], sizes = [1, 256], strides = [1, 1]} : vector<16x256xf32> to vector<1x256xf32>
    %59 = vector.extract_strided_slice %19 {offsets = [10, 0], sizes = [1, 256], strides = [1, 1]} : vector<16x256xf32> to vector<1x256xf32>
    %60 = tpu.concatenate %58, %59 in 0 : vector<1x256xf32>, vector<1x256xf32> -> vector<2x256xf32>
    %61 = arith.addf %57, %60 : vector<2x256xf32>
    %62 = vector.extract_strided_slice %17 {offsets = [6, 0], sizes = [1, 256], strides = [1, 1]} : vector<16x256xf32> to vector<1x256xf32>
    %63 = vector.extract_strided_slice %17 {offsets = [14, 0], sizes = [1, 256], strides = [1, 1]} : vector<16x256xf32> to vector<1x256xf32>
    %64 = tpu.concatenate %62, %63 in 0 : vector<1x256xf32>, vector<1x256xf32> -> vector<2x256xf32>
    %65 = vector.extract_strided_slice %19 {offsets = [1, 0], sizes = [1, 256], strides = [1, 1]} : vector<16x256xf32> to vector<1x256xf32>
    %66 = vector.extract_strided_slice %19 {offsets = [9, 0], sizes = [1, 256], strides = [1, 1]} : vector<16x256xf32> to vector<1x256xf32>
    %67 = tpu.concatenate %65, %66 in 0 : vector<1x256xf32>, vector<1x256xf32> -> vector<2x256xf32>
    %68 = arith.addf %64, %67 : vector<2x256xf32>
    %69 = vector.extract_strided_slice %17 {offsets = [7, 0], sizes = [1, 256], strides = [1, 1]} : vector<16x256xf32> to vector<1x256xf32>
    %70 = vector.extract_strided_slice %17 {offsets = [15, 0], sizes = [1, 256], strides = [1, 1]} : vector<16x256xf32> to vector<1x256xf32>
    %71 = tpu.concatenate %69, %70 in 0 : vector<1x256xf32>, vector<1x256xf32> -> vector<2x256xf32>
    %72 = vector.extract_strided_slice %19 {offsets = [0, 0], sizes = [1, 256], strides = [1, 1]} : vector<16x256xf32> to vector<1x256xf32>
    %73 = vector.extract_strided_slice %19 {offsets = [8, 0], sizes = [1, 256], strides = [1, 1]} : vector<16x256xf32> to vector<1x256xf32>
    %74 = tpu.concatenate %72, %73 in 0 : vector<1x256xf32>, vector<1x256xf32> -> vector<2x256xf32>
    %75 = arith.addf %71, %74 : vector<2x256xf32>
    %c0_22 = arith.constant 0 : index
    %c0_23 = arith.constant 0 : index
    %76 = vector.load %arg4[%c0_22, %c0_23] : memref<64x256xf32, #tpu.memory_space<vmem>>, vector<64x256xf32>
    %cst_24 = arith.constant 0.000000e+00 : f32
    %77 = vector.broadcast %cst_24 : f32 to vector<2x64xf32>
    %cst_25 = arith.constant 0.000000e+00 : f32
    %78 = vector.broadcast %cst_25 : f32 to vector<2x64xf32>
    %cst_26 = arith.constant dense<0.000000e+00> : vector<2x256xf32>
    %79 = tpu.matmul %77, %76, %cst_26 {dimension_numbers = #tpu.dot_dimension_numbers<[1], [0], [0], [1], [0, 0, 1, 1], [], []>} : vector<2x64xf32>, vector<64x256xf32>, vector<2x256xf32> -> vector<2x256xf32>
    %80 = arith.addf %26, %79 : vector<2x256xf32>
    %81 = vector.extract_strided_slice %80 {offsets = [0, 0], sizes = [2, 64], strides = [1, 1]} : vector<2x256xf32> to vector<2x64xf32>
    %82 = arith.negf %81 : vector<2x64xf32>
    %83 = math.exp %82 : vector<2x64xf32>
    %cst_27 = arith.constant 1.000000e+00 : f32
    %84 = vector.broadcast %cst_27 : f32 to vector<2x64xf32>
    %85 = arith.addf %84, %83 : vector<2x64xf32>
    %86 = arith.divf %84, %85 : vector<2x64xf32>
    %87 = vector.extract_strided_slice %80 {offsets = [0, 64], sizes = [2, 64], strides = [1, 1]} : vector<2x256xf32> to vector<2x64xf32>
    %88 = arith.negf %87 : vector<2x64xf32>
    %89 = math.exp %88 : vector<2x64xf32>
    %cst_28 = arith.constant 1.000000e+00 : f32
    %90 = vector.broadcast %cst_28 : f32 to vector<2x64xf32>
    %91 = arith.addf %90, %89 : vector<2x64xf32>
    %92 = arith.divf %90, %91 : vector<2x64xf32>
    %93 = vector.extract_strided_slice %80 {offsets = [0, 128], sizes = [2, 64], strides = [1, 1]} : vector<2x256xf32> to vector<2x64xf32>
    %94 = math.tanh %93 : vector<2x64xf32>
    %95 = vector.extract_strided_slice %80 {offsets = [0, 192], sizes = [2, 64], strides = [1, 1]} : vector<2x256xf32> to vector<2x64xf32>
    %96 = arith.negf %95 : vector<2x64xf32>
    %97 = math.exp %96 : vector<2x64xf32>
    %cst_29 = arith.constant 1.000000e+00 : f32
    %98 = vector.broadcast %cst_29 : f32 to vector<2x64xf32>
    %99 = arith.addf %98, %97 : vector<2x64xf32>
    %100 = arith.divf %98, %99 : vector<2x64xf32>
    %101 = arith.mulf %92, %78 : vector<2x64xf32>
    %102 = arith.mulf %86, %94 : vector<2x64xf32>
    %103 = arith.addf %101, %102 : vector<2x64xf32>
    %104 = math.tanh %103 : vector<2x64xf32>
    %105 = arith.mulf %100, %104 : vector<2x64xf32>
    %cst_30 = arith.constant dense<0.000000e+00> : vector<2x256xf32>
    %106 = tpu.matmul %105, %76, %cst_30 {dimension_numbers = #tpu.dot_dimension_numbers<[1], [0], [0], [1], [0, 0, 1, 1], [], []>} : vector<2x64xf32>, vector<64x256xf32>, vector<2x256xf32> -> vector<2x256xf32>
    %107 = arith.addf %33, %106 : vector<2x256xf32>
    %108 = vector.extract_strided_slice %107 {offsets = [0, 0], sizes = [2, 64], strides = [1, 1]} : vector<2x256xf32> to vector<2x64xf32>
    %109 = arith.negf %108 : vector<2x64xf32>
    %110 = math.exp %109 : vector<2x64xf32>
    %cst_31 = arith.constant 1.000000e+00 : f32
    %111 = vector.broadcast %cst_31 : f32 to vector<2x64xf32>
    %112 = arith.addf %111, %110 : vector<2x64xf32>
    %113 = arith.divf %111, %112 : vector<2x64xf32>
    %114 = vector.extract_strided_slice %107 {offsets = [0, 64], sizes = [2, 64], strides = [1, 1]} : vector<2x256xf32> to vector<2x64xf32>
    %115 = arith.negf %114 : vector<2x64xf32>
    %116 = math.exp %115 : vector<2x64xf32>
    %cst_32 = arith.constant 1.000000e+00 : f32
    %117 = vector.broadcast %cst_32 : f32 to vector<2x64xf32>
    %118 = arith.addf %117, %116 : vector<2x64xf32>
    %119 = arith.divf %117, %118 : vector<2x64xf32>
    %120 = vector.extract_strided_slice %107 {offsets = [0, 128], sizes = [2, 64], strides = [1, 1]} : vector<2x256xf32> to vector<2x64xf32>
    %121 = math.tanh %120 : vector<2x64xf32>
    %122 = vector.extract_strided_slice %107 {offsets = [0, 192], sizes = [2, 64], strides = [1, 1]} : vector<2x256xf32> to vector<2x64xf32>
    %123 = arith.negf %122 : vector<2x64xf32>
    %124 = math.exp %123 : vector<2x64xf32>
    %cst_33 = arith.constant 1.000000e+00 : f32
    %125 = vector.broadcast %cst_33 : f32 to vector<2x64xf32>
    %126 = arith.addf %125, %124 : vector<2x64xf32>
    %127 = arith.divf %125, %126 : vector<2x64xf32>
    %128 = arith.mulf %119, %103 : vector<2x64xf32>
    %129 = arith.mulf %113, %121 : vector<2x64xf32>
    %130 = arith.addf %128, %129 : vector<2x64xf32>
    %131 = math.tanh %130 : vector<2x64xf32>
    %132 = arith.mulf %127, %131 : vector<2x64xf32>
    %cst_34 = arith.constant dense<0.000000e+00> : vector<2x256xf32>
    %133 = tpu.matmul %132, %76, %cst_34 {dimension_numbers = #tpu.dot_dimension_numbers<[1], [0], [0], [1], [0, 0, 1, 1], [], []>} : vector<2x64xf32>, vector<64x256xf32>, vector<2x256xf32> -> vector<2x256xf32>
    %134 = arith.addf %40, %133 : vector<2x256xf32>
    %135 = vector.extract_strided_slice %134 {offsets = [0, 0], sizes = [2, 64], strides = [1, 1]} : vector<2x256xf32> to vector<2x64xf32>
    %136 = arith.negf %135 : vector<2x64xf32>
    %137 = math.exp %136 : vector<2x64xf32>
    %cst_35 = arith.constant 1.000000e+00 : f32
    %138 = vector.broadcast %cst_35 : f32 to vector<2x64xf32>
    %139 = arith.addf %138, %137 : vector<2x64xf32>
    %140 = arith.divf %138, %139 : vector<2x64xf32>
    %141 = vector.extract_strided_slice %134 {offsets = [0, 64], sizes = [2, 64], strides = [1, 1]} : vector<2x256xf32> to vector<2x64xf32>
    %142 = arith.negf %141 : vector<2x64xf32>
    %143 = math.exp %142 : vector<2x64xf32>
    %cst_36 = arith.constant 1.000000e+00 : f32
    %144 = vector.broadcast %cst_36 : f32 to vector<2x64xf32>
    %145 = arith.addf %144, %143 : vector<2x64xf32>
    %146 = arith.divf %144, %145 : vector<2x64xf32>
    %147 = vector.extract_strided_slice %134 {offsets = [0, 128], sizes = [2, 64], strides = [1, 1]} : vector<2x256xf32> to vector<2x64xf32>
    %148 = math.tanh %147 : vector<2x64xf32>
    %149 = vector.extract_strided_slice %134 {offsets = [0, 192], sizes = [2, 64], strides = [1, 1]} : vector<2x256xf32> to vector<2x64xf32>
    %150 = arith.negf %149 : vector<2x64xf32>
    %151 = math.exp %150 : vector<2x64xf32>
    %cst_37 = arith.constant 1.000000e+00 : f32
    %152 = vector.broadcast %cst_37 : f32 to vector<2x64xf32>
    %153 = arith.addf %152, %151 : vector<2x64xf32>
    %154 = arith.divf %152, %153 : vector<2x64xf32>
    %155 = arith.mulf %146, %130 : vector<2x64xf32>
    %156 = arith.mulf %140, %148 : vector<2x64xf32>
    %157 = arith.addf %155, %156 : vector<2x64xf32>
    %158 = math.tanh %157 : vector<2x64xf32>
    %159 = arith.mulf %154, %158 : vector<2x64xf32>
    %cst_38 = arith.constant dense<0.000000e+00> : vector<2x256xf32>
    %160 = tpu.matmul %159, %76, %cst_38 {dimension_numbers = #tpu.dot_dimension_numbers<[1], [0], [0], [1], [0, 0, 1, 1], [], []>} : vector<2x64xf32>, vector<64x256xf32>, vector<2x256xf32> -> vector<2x256xf32>
    %161 = arith.addf %47, %160 : vector<2x256xf32>
    %162 = vector.extract_strided_slice %161 {offsets = [0, 0], sizes = [2, 64], strides = [1, 1]} : vector<2x256xf32> to vector<2x64xf32>
    %163 = arith.negf %162 : vector<2x64xf32>
    %164 = math.exp %163 : vector<2x64xf32>
    %cst_39 = arith.constant 1.000000e+00 : f32
    %165 = vector.broadcast %cst_39 : f32 to vector<2x64xf32>
    %166 = arith.addf %165, %164 : vector<2x64xf32>
    %167 = arith.divf %165, %166 : vector<2x64xf32>
    %168 = vector.extract_strided_slice %161 {offsets = [0, 64], sizes = [2, 64], strides = [1, 1]} : vector<2x256xf32> to vector<2x64xf32>
    %169 = arith.negf %168 : vector<2x64xf32>
    %170 = math.exp %169 : vector<2x64xf32>
    %cst_40 = arith.constant 1.000000e+00 : f32
    %171 = vector.broadcast %cst_40 : f32 to vector<2x64xf32>
    %172 = arith.addf %171, %170 : vector<2x64xf32>
    %173 = arith.divf %171, %172 : vector<2x64xf32>
    %174 = vector.extract_strided_slice %161 {offsets = [0, 128], sizes = [2, 64], strides = [1, 1]} : vector<2x256xf32> to vector<2x64xf32>
    %175 = math.tanh %174 : vector<2x64xf32>
    %176 = vector.extract_strided_slice %161 {offsets = [0, 192], sizes = [2, 64], strides = [1, 1]} : vector<2x256xf32> to vector<2x64xf32>
    %177 = arith.negf %176 : vector<2x64xf32>
    %178 = math.exp %177 : vector<2x64xf32>
    %cst_41 = arith.constant 1.000000e+00 : f32
    %179 = vector.broadcast %cst_41 : f32 to vector<2x64xf32>
    %180 = arith.addf %179, %178 : vector<2x64xf32>
    %181 = arith.divf %179, %180 : vector<2x64xf32>
    %182 = arith.mulf %173, %157 : vector<2x64xf32>
    %183 = arith.mulf %167, %175 : vector<2x64xf32>
    %184 = arith.addf %182, %183 : vector<2x64xf32>
    %185 = math.tanh %184 : vector<2x64xf32>
    %186 = arith.mulf %181, %185 : vector<2x64xf32>
    %cst_42 = arith.constant dense<0.000000e+00> : vector<2x256xf32>
    %187 = tpu.matmul %186, %76, %cst_42 {dimension_numbers = #tpu.dot_dimension_numbers<[1], [0], [0], [1], [0, 0, 1, 1], [], []>} : vector<2x64xf32>, vector<64x256xf32>, vector<2x256xf32> -> vector<2x256xf32>
    %188 = arith.addf %54, %187 : vector<2x256xf32>
    %189 = vector.extract_strided_slice %188 {offsets = [0, 0], sizes = [2, 64], strides = [1, 1]} : vector<2x256xf32> to vector<2x64xf32>
    %190 = arith.negf %189 : vector<2x64xf32>
    %191 = math.exp %190 : vector<2x64xf32>
    %cst_43 = arith.constant 1.000000e+00 : f32
    %192 = vector.broadcast %cst_43 : f32 to vector<2x64xf32>
    %193 = arith.addf %192, %191 : vector<2x64xf32>
    %194 = arith.divf %192, %193 : vector<2x64xf32>
    %195 = vector.extract_strided_slice %188 {offsets = [0, 64], sizes = [2, 64], strides = [1, 1]} : vector<2x256xf32> to vector<2x64xf32>
    %196 = arith.negf %195 : vector<2x64xf32>
    %197 = math.exp %196 : vector<2x64xf32>
    %cst_44 = arith.constant 1.000000e+00 : f32
    %198 = vector.broadcast %cst_44 : f32 to vector<2x64xf32>
    %199 = arith.addf %198, %197 : vector<2x64xf32>
    %200 = arith.divf %198, %199 : vector<2x64xf32>
    %201 = vector.extract_strided_slice %188 {offsets = [0, 128], sizes = [2, 64], strides = [1, 1]} : vector<2x256xf32> to vector<2x64xf32>
    %202 = math.tanh %201 : vector<2x64xf32>
    %203 = vector.extract_strided_slice %188 {offsets = [0, 192], sizes = [2, 64], strides = [1, 1]} : vector<2x256xf32> to vector<2x64xf32>
    %204 = arith.negf %203 : vector<2x64xf32>
    %205 = math.exp %204 : vector<2x64xf32>
    %cst_45 = arith.constant 1.000000e+00 : f32
    %206 = vector.broadcast %cst_45 : f32 to vector<2x64xf32>
    %207 = arith.addf %206, %205 : vector<2x64xf32>
    %208 = arith.divf %206, %207 : vector<2x64xf32>
    %209 = arith.mulf %200, %184 : vector<2x64xf32>
    %210 = arith.mulf %194, %202 : vector<2x64xf32>
    %211 = arith.addf %209, %210 : vector<2x64xf32>
    %212 = math.tanh %211 : vector<2x64xf32>
    %213 = arith.mulf %208, %212 : vector<2x64xf32>
    %cst_46 = arith.constant dense<0.000000e+00> : vector<2x256xf32>
    %214 = tpu.matmul %213, %76, %cst_46 {dimension_numbers = #tpu.dot_dimension_numbers<[1], [0], [0], [1], [0, 0, 1, 1], [], []>} : vector<2x64xf32>, vector<64x256xf32>, vector<2x256xf32> -> vector<2x256xf32>
    %215 = arith.addf %61, %214 : vector<2x256xf32>
    %216 = vector.extract_strided_slice %215 {offsets = [0, 0], sizes = [2, 64], strides = [1, 1]} : vector<2x256xf32> to vector<2x64xf32>
    %217 = arith.negf %216 : vector<2x64xf32>
    %218 = math.exp %217 : vector<2x64xf32>
    %cst_47 = arith.constant 1.000000e+00 : f32
    %219 = vector.broadcast %cst_47 : f32 to vector<2x64xf32>
    %220 = arith.addf %219, %218 : vector<2x64xf32>
    %221 = arith.divf %219, %220 : vector<2x64xf32>
    %222 = vector.extract_strided_slice %215 {offsets = [0, 64], sizes = [2, 64], strides = [1, 1]} : vector<2x256xf32> to vector<2x64xf32>
    %223 = arith.negf %222 : vector<2x64xf32>
    %224 = math.exp %223 : vector<2x64xf32>
    %cst_48 = arith.constant 1.000000e+00 : f32
    %225 = vector.broadcast %cst_48 : f32 to vector<2x64xf32>
    %226 = arith.addf %225, %224 : vector<2x64xf32>
    %227 = arith.divf %225, %226 : vector<2x64xf32>
    %228 = vector.extract_strided_slice %215 {offsets = [0, 128], sizes = [2, 64], strides = [1, 1]} : vector<2x256xf32> to vector<2x64xf32>
    %229 = math.tanh %228 : vector<2x64xf32>
    %230 = vector.extract_strided_slice %215 {offsets = [0, 192], sizes = [2, 64], strides = [1, 1]} : vector<2x256xf32> to vector<2x64xf32>
    %231 = arith.negf %230 : vector<2x64xf32>
    %232 = math.exp %231 : vector<2x64xf32>
    %cst_49 = arith.constant 1.000000e+00 : f32
    %233 = vector.broadcast %cst_49 : f32 to vector<2x64xf32>
    %234 = arith.addf %233, %232 : vector<2x64xf32>
    %235 = arith.divf %233, %234 : vector<2x64xf32>
    %236 = arith.mulf %227, %211 : vector<2x64xf32>
    %237 = arith.mulf %221, %229 : vector<2x64xf32>
    %238 = arith.addf %236, %237 : vector<2x64xf32>
    %239 = math.tanh %238 : vector<2x64xf32>
    %240 = arith.mulf %235, %239 : vector<2x64xf32>
    %cst_50 = arith.constant dense<0.000000e+00> : vector<2x256xf32>
    %241 = tpu.matmul %240, %76, %cst_50 {dimension_numbers = #tpu.dot_dimension_numbers<[1], [0], [0], [1], [0, 0, 1, 1], [], []>} : vector<2x64xf32>, vector<64x256xf32>, vector<2x256xf32> -> vector<2x256xf32>
    %242 = arith.addf %68, %241 : vector<2x256xf32>
    %243 = vector.extract_strided_slice %242 {offsets = [0, 0], sizes = [2, 64], strides = [1, 1]} : vector<2x256xf32> to vector<2x64xf32>
    %244 = arith.negf %243 : vector<2x64xf32>
    %245 = math.exp %244 : vector<2x64xf32>
    %cst_51 = arith.constant 1.000000e+00 : f32
    %246 = vector.broadcast %cst_51 : f32 to vector<2x64xf32>
    %247 = arith.addf %246, %245 : vector<2x64xf32>
    %248 = arith.divf %246, %247 : vector<2x64xf32>
    %249 = vector.extract_strided_slice %242 {offsets = [0, 64], sizes = [2, 64], strides = [1, 1]} : vector<2x256xf32> to vector<2x64xf32>
    %250 = arith.negf %249 : vector<2x64xf32>
    %251 = math.exp %250 : vector<2x64xf32>
    %cst_52 = arith.constant 1.000000e+00 : f32
    %252 = vector.broadcast %cst_52 : f32 to vector<2x64xf32>
    %253 = arith.addf %252, %251 : vector<2x64xf32>
    %254 = arith.divf %252, %253 : vector<2x64xf32>
    %255 = vector.extract_strided_slice %242 {offsets = [0, 128], sizes = [2, 64], strides = [1, 1]} : vector<2x256xf32> to vector<2x64xf32>
    %256 = math.tanh %255 : vector<2x64xf32>
    %257 = vector.extract_strided_slice %242 {offsets = [0, 192], sizes = [2, 64], strides = [1, 1]} : vector<2x256xf32> to vector<2x64xf32>
    %258 = arith.negf %257 : vector<2x64xf32>
    %259 = math.exp %258 : vector<2x64xf32>
    %cst_53 = arith.constant 1.000000e+00 : f32
    %260 = vector.broadcast %cst_53 : f32 to vector<2x64xf32>
    %261 = arith.addf %260, %259 : vector<2x64xf32>
    %262 = arith.divf %260, %261 : vector<2x64xf32>
    %263 = arith.mulf %254, %238 : vector<2x64xf32>
    %264 = arith.mulf %248, %256 : vector<2x64xf32>
    %265 = arith.addf %263, %264 : vector<2x64xf32>
    %266 = math.tanh %265 : vector<2x64xf32>
    %267 = arith.mulf %262, %266 : vector<2x64xf32>
    %cst_54 = arith.constant dense<0.000000e+00> : vector<2x256xf32>
    %268 = tpu.matmul %267, %76, %cst_54 {dimension_numbers = #tpu.dot_dimension_numbers<[1], [0], [0], [1], [0, 0, 1, 1], [], []>} : vector<2x64xf32>, vector<64x256xf32>, vector<2x256xf32> -> vector<2x256xf32>
    %269 = arith.addf %75, %268 : vector<2x256xf32>
    %270 = vector.extract_strided_slice %269 {offsets = [0, 0], sizes = [2, 64], strides = [1, 1]} : vector<2x256xf32> to vector<2x64xf32>
    %271 = arith.negf %270 : vector<2x64xf32>
    %272 = math.exp %271 : vector<2x64xf32>
    %cst_55 = arith.constant 1.000000e+00 : f32
    %273 = vector.broadcast %cst_55 : f32 to vector<2x64xf32>
    %274 = arith.addf %273, %272 : vector<2x64xf32>
    %275 = arith.divf %273, %274 : vector<2x64xf32>
    %276 = vector.extract_strided_slice %269 {offsets = [0, 64], sizes = [2, 64], strides = [1, 1]} : vector<2x256xf32> to vector<2x64xf32>
    %277 = arith.negf %276 : vector<2x64xf32>
    %278 = math.exp %277 : vector<2x64xf32>
    %cst_56 = arith.constant 1.000000e+00 : f32
    %279 = vector.broadcast %cst_56 : f32 to vector<2x64xf32>
    %280 = arith.addf %279, %278 : vector<2x64xf32>
    %281 = arith.divf %279, %280 : vector<2x64xf32>
    %282 = vector.extract_strided_slice %269 {offsets = [0, 128], sizes = [2, 64], strides = [1, 1]} : vector<2x256xf32> to vector<2x64xf32>
    %283 = math.tanh %282 : vector<2x64xf32>
    %284 = vector.extract_strided_slice %269 {offsets = [0, 192], sizes = [2, 64], strides = [1, 1]} : vector<2x256xf32> to vector<2x64xf32>
    %285 = arith.negf %284 : vector<2x64xf32>
    %286 = math.exp %285 : vector<2x64xf32>
    %cst_57 = arith.constant 1.000000e+00 : f32
    %287 = vector.broadcast %cst_57 : f32 to vector<2x64xf32>
    %288 = arith.addf %287, %286 : vector<2x64xf32>
    %289 = arith.divf %287, %288 : vector<2x64xf32>
    %290 = arith.mulf %281, %265 : vector<2x64xf32>
    %291 = arith.mulf %275, %283 : vector<2x64xf32>
    %292 = arith.addf %290, %291 : vector<2x64xf32>
    %293 = math.tanh %292 : vector<2x64xf32>
    %294 = arith.mulf %289, %293 : vector<2x64xf32>
    %295 = vector.extract_strided_slice %105 {offsets = [0, 0], sizes = [2, 16], strides = [1, 1]} : vector<2x64xf32> to vector<2x16xf32>
    %296 = vector.extract_strided_slice %294 {offsets = [0, 32], sizes = [2, 16], strides = [1, 1]} : vector<2x64xf32> to vector<2x16xf32>
    %297 = tpu.concatenate %295, %296 in 1 : vector<2x16xf32>, vector<2x16xf32> -> vector<2x32xf32>
    %298 = vector.extract_strided_slice %132 {offsets = [0, 0], sizes = [2, 16], strides = [1, 1]} : vector<2x64xf32> to vector<2x16xf32>
    %299 = vector.extract_strided_slice %267 {offsets = [0, 32], sizes = [2, 16], strides = [1, 1]} : vector<2x64xf32> to vector<2x16xf32>
    %300 = tpu.concatenate %298, %299 in 1 : vector<2x16xf32>, vector<2x16xf32> -> vector<2x32xf32>
    %301 = vector.extract_strided_slice %159 {offsets = [0, 0], sizes = [2, 16], strides = [1, 1]} : vector<2x64xf32> to vector<2x16xf32>
    %302 = vector.extract_strided_slice %240 {offsets = [0, 32], sizes = [2, 16], strides = [1, 1]} : vector<2x64xf32> to vector<2x16xf32>
    %303 = tpu.concatenate %301, %302 in 1 : vector<2x16xf32>, vector<2x16xf32> -> vector<2x32xf32>
    %304 = vector.extract_strided_slice %186 {offsets = [0, 0], sizes = [2, 16], strides = [1, 1]} : vector<2x64xf32> to vector<2x16xf32>
    %305 = vector.extract_strided_slice %213 {offsets = [0, 32], sizes = [2, 16], strides = [1, 1]} : vector<2x64xf32> to vector<2x16xf32>
    %306 = tpu.concatenate %304, %305 in 1 : vector<2x16xf32>, vector<2x16xf32> -> vector<2x32xf32>
    %307 = vector.extract_strided_slice %213 {offsets = [0, 0], sizes = [2, 16], strides = [1, 1]} : vector<2x64xf32> to vector<2x16xf32>
    %308 = vector.extract_strided_slice %186 {offsets = [0, 32], sizes = [2, 16], strides = [1, 1]} : vector<2x64xf32> to vector<2x16xf32>
    %309 = tpu.concatenate %307, %308 in 1 : vector<2x16xf32>, vector<2x16xf32> -> vector<2x32xf32>
    %310 = vector.extract_strided_slice %240 {offsets = [0, 0], sizes = [2, 16], strides = [1, 1]} : vector<2x64xf32> to vector<2x16xf32>
    %311 = vector.extract_strided_slice %159 {offsets = [0, 32], sizes = [2, 16], strides = [1, 1]} : vector<2x64xf32> to vector<2x16xf32>
    %312 = tpu.concatenate %310, %311 in 1 : vector<2x16xf32>, vector<2x16xf32> -> vector<2x32xf32>
    %313 = vector.extract_strided_slice %267 {offsets = [0, 0], sizes = [2, 16], strides = [1, 1]} : vector<2x64xf32> to vector<2x16xf32>
    %314 = vector.extract_strided_slice %132 {offsets = [0, 32], sizes = [2, 16], strides = [1, 1]} : vector<2x64xf32> to vector<2x16xf32>
    %315 = tpu.concatenate %313, %314 in 1 : vector<2x16xf32>, vector<2x16xf32> -> vector<2x32xf32>
    %316 = vector.extract_strided_slice %294 {offsets = [0, 0], sizes = [2, 16], strides = [1, 1]} : vector<2x64xf32> to vector<2x16xf32>
    %317 = vector.extract_strided_slice %105 {offsets = [0, 32], sizes = [2, 16], strides = [1, 1]} : vector<2x64xf32> to vector<2x16xf32>
    %318 = tpu.concatenate %316, %317 in 1 : vector<2x16xf32>, vector<2x16xf32> -> vector<2x32xf32>
    %319 = vector.extract_strided_slice %105 {offsets = [0, 16], sizes = [2, 16], strides = [1, 1]} : vector<2x64xf32> to vector<2x16xf32>
    %320 = vector.extract_strided_slice %294 {offsets = [0, 48], sizes = [2, 16], strides = [1, 1]} : vector<2x64xf32> to vector<2x16xf32>
    %321 = tpu.concatenate %319, %320 in 1 : vector<2x16xf32>, vector<2x16xf32> -> vector<2x32xf32>
    %322 = vector.extract_strided_slice %132 {offsets = [0, 16], sizes = [2, 16], strides = [1, 1]} : vector<2x64xf32> to vector<2x16xf32>
    %323 = vector.extract_strided_slice %267 {offsets = [0, 48], sizes = [2, 16], strides = [1, 1]} : vector<2x64xf32> to vector<2x16xf32>
    %324 = tpu.concatenate %322, %323 in 1 : vector<2x16xf32>, vector<2x16xf32> -> vector<2x32xf32>
    %325 = vector.extract_strided_slice %159 {offsets = [0, 16], sizes = [2, 16], strides = [1, 1]} : vector<2x64xf32> to vector<2x16xf32>
    %326 = vector.extract_strided_slice %240 {offsets = [0, 48], sizes = [2, 16], strides = [1, 1]} : vector<2x64xf32> to vector<2x16xf32>
    %327 = tpu.concatenate %325, %326 in 1 : vector<2x16xf32>, vector<2x16xf32> -> vector<2x32xf32>
    %328 = vector.extract_strided_slice %186 {offsets = [0, 16], sizes = [2, 16], strides = [1, 1]} : vector<2x64xf32> to vector<2x16xf32>
    %329 = vector.extract_strided_slice %213 {offsets = [0, 48], sizes = [2, 16], strides = [1, 1]} : vector<2x64xf32> to vector<2x16xf32>
    %330 = tpu.concatenate %328, %329 in 1 : vector<2x16xf32>, vector<2x16xf32> -> vector<2x32xf32>
    %331 = vector.extract_strided_slice %213 {offsets = [0, 16], sizes = [2, 16], strides = [1, 1]} : vector<2x64xf32> to vector<2x16xf32>
    %332 = vector.extract_strided_slice %186 {offsets = [0, 48], sizes = [2, 16], strides = [1, 1]} : vector<2x64xf32> to vector<2x16xf32>
    %333 = tpu.concatenate %331, %332 in 1 : vector<2x16xf32>, vector<2x16xf32> -> vector<2x32xf32>
    %334 = vector.extract_strided_slice %240 {offsets = [0, 16], sizes = [2, 16], strides = [1, 1]} : vector<2x64xf32> to vector<2x16xf32>
    %335 = vector.extract_strided_slice %159 {offsets = [0, 48], sizes = [2, 16], strides = [1, 1]} : vector<2x64xf32> to vector<2x16xf32>
    %336 = tpu.concatenate %334, %335 in 1 : vector<2x16xf32>, vector<2x16xf32> -> vector<2x32xf32>
    %337 = vector.extract_strided_slice %267 {offsets = [0, 16], sizes = [2, 16], strides = [1, 1]} : vector<2x64xf32> to vector<2x16xf32>
    %338 = vector.extract_strided_slice %132 {offsets = [0, 48], sizes = [2, 16], strides = [1, 1]} : vector<2x64xf32> to vector<2x16xf32>
    %339 = tpu.concatenate %337, %338 in 1 : vector<2x16xf32>, vector<2x16xf32> -> vector<2x32xf32>
    %340 = vector.extract_strided_slice %294 {offsets = [0, 16], sizes = [2, 16], strides = [1, 1]} : vector<2x64xf32> to vector<2x16xf32>
    %341 = vector.extract_strided_slice %105 {offsets = [0, 48], sizes = [2, 16], strides = [1, 1]} : vector<2x64xf32> to vector<2x16xf32>
    %342 = tpu.concatenate %340, %341 in 1 : vector<2x16xf32>, vector<2x16xf32> -> vector<2x32xf32>
    %343 = vector.extract_strided_slice %297 {offsets = [0, 0], sizes = [1, 32], strides = [1, 1]} : vector<2x32xf32> to vector<1x32xf32>
    %344 = vector.extract_strided_slice %300 {offsets = [0, 0], sizes = [1, 32], strides = [1, 1]} : vector<2x32xf32> to vector<1x32xf32>
    %345 = vector.extract_strided_slice %303 {offsets = [0, 0], sizes = [1, 32], strides = [1, 1]} : vector<2x32xf32> to vector<1x32xf32>
    %346 = vector.extract_strided_slice %306 {offsets = [0, 0], sizes = [1, 32], strides = [1, 1]} : vector<2x32xf32> to vector<1x32xf32>
    %347 = vector.extract_strided_slice %309 {offsets = [0, 0], sizes = [1, 32], strides = [1, 1]} : vector<2x32xf32> to vector<1x32xf32>
    %348 = vector.extract_strided_slice %312 {offsets = [0, 0], sizes = [1, 32], strides = [1, 1]} : vector<2x32xf32> to vector<1x32xf32>
    %349 = vector.extract_strided_slice %315 {offsets = [0, 0], sizes = [1, 32], strides = [1, 1]} : vector<2x32xf32> to vector<1x32xf32>
    %350 = vector.extract_strided_slice %318 {offsets = [0, 0], sizes = [1, 32], strides = [1, 1]} : vector<2x32xf32> to vector<1x32xf32>
    %351 = vector.extract_strided_slice %297 {offsets = [1, 0], sizes = [1, 32], strides = [1, 1]} : vector<2x32xf32> to vector<1x32xf32>
    %352 = vector.extract_strided_slice %300 {offsets = [1, 0], sizes = [1, 32], strides = [1, 1]} : vector<2x32xf32> to vector<1x32xf32>
    %353 = vector.extract_strided_slice %303 {offsets = [1, 0], sizes = [1, 32], strides = [1, 1]} : vector<2x32xf32> to vector<1x32xf32>
    %354 = vector.extract_strided_slice %306 {offsets = [1, 0], sizes = [1, 32], strides = [1, 1]} : vector<2x32xf32> to vector<1x32xf32>
    %355 = vector.extract_strided_slice %309 {offsets = [1, 0], sizes = [1, 32], strides = [1, 1]} : vector<2x32xf32> to vector<1x32xf32>
    %356 = vector.extract_strided_slice %312 {offsets = [1, 0], sizes = [1, 32], strides = [1, 1]} : vector<2x32xf32> to vector<1x32xf32>
    %357 = vector.extract_strided_slice %315 {offsets = [1, 0], sizes = [1, 32], strides = [1, 1]} : vector<2x32xf32> to vector<1x32xf32>
    %358 = vector.extract_strided_slice %318 {offsets = [1, 0], sizes = [1, 32], strides = [1, 1]} : vector<2x32xf32> to vector<1x32xf32>
    %359 = tpu.concatenate %343, %344, %345, %346, %347, %348, %349, %350, %351, %352, %353, %354, %355, %356, %357, %358 in 0 : vector<1x32xf32>, vector<1x32xf32>, vector<1x32xf32>, vector<1x32xf32>, vector<1x32xf32>, vector<1x32xf32>, vector<1x32xf32>, vector<1x32xf32>, vector<1x32xf32>, vector<1x32xf32>, vector<1x32xf32>, vector<1x32xf32>, vector<1x32xf32>, vector<1x32xf32>, vector<1x32xf32>, vector<1x32xf32> -> vector<16x32xf32>
    %c0_58 = arith.constant 0 : index
    %c0_59 = arith.constant 0 : index
    %360 = vector.load %arg10[%c0_58, %c0_59] : memref<16x32xf32, #tpu.memory_space<vmem>>, vector<16x32xf32>
    tpu.vector_store %arg10[%c0_58, %c0_59], %359 {strides = array<i32>} : memref<16x32xf32, #tpu.memory_space<vmem>>, vector<16x32xf32>,
    %361 = vector.extract_strided_slice %321 {offsets = [0, 0], sizes = [1, 32], strides = [1, 1]} : vector<2x32xf32> to vector<1x32xf32>
    %362 = vector.extract_strided_slice %324 {offsets = [0, 0], sizes = [1, 32], strides = [1, 1]} : vector<2x32xf32> to vector<1x32xf32>
    %363 = vector.extract_strided_slice %327 {offsets = [0, 0], sizes = [1, 32], strides = [1, 1]} : vector<2x32xf32> to vector<1x32xf32>
    %364 = vector.extract_strided_slice %330 {offsets = [0, 0], sizes = [1, 32], strides = [1, 1]} : vector<2x32xf32> to vector<1x32xf32>
    %365 = vector.extract_strided_slice %333 {offsets = [0, 0], sizes = [1, 32], strides = [1, 1]} : vector<2x32xf32> to vector<1x32xf32>
    %366 = vector.extract_strided_slice %336 {offsets = [0, 0], sizes = [1, 32], strides = [1, 1]} : vector<2x32xf32> to vector<1x32xf32>
    %367 = vector.extract_strided_slice %339 {offsets = [0, 0], sizes = [1, 32], strides = [1, 1]} : vector<2x32xf32> to vector<1x32xf32>
    %368 = vector.extract_strided_slice %342 {offsets = [0, 0], sizes = [1, 32], strides = [1, 1]} : vector<2x32xf32> to vector<1x32xf32>
    %369 = vector.extract_strided_slice %321 {offsets = [1, 0], sizes = [1, 32], strides = [1, 1]} : vector<2x32xf32> to vector<1x32xf32>
    %370 = vector.extract_strided_slice %324 {offsets = [1, 0], sizes = [1, 32], strides = [1, 1]} : vector<2x32xf32> to vector<1x32xf32>
    %371 = vector.extract_strided_slice %327 {offsets = [1, 0], sizes = [1, 32], strides = [1, 1]} : vector<2x32xf32> to vector<1x32xf32>
    %372 = vector.extract_strided_slice %330 {offsets = [1, 0], sizes = [1, 32], strides = [1, 1]} : vector<2x32xf32> to vector<1x32xf32>
    %373 = vector.extract_strided_slice %333 {offsets = [1, 0], sizes = [1, 32], strides = [1, 1]} : vector<2x32xf32> to vector<1x32xf32>
    %374 = vector.extract_strided_slice %336 {offsets = [1, 0], sizes = [1, 32], strides = [1, 1]} : vector<2x32xf32> to vector<1x32xf32>
    %375 = vector.extract_strided_slice %339 {offsets = [1, 0], sizes = [1, 32], strides = [1, 1]} : vector<2x32xf32> to vector<1x32xf32>
    %376 = vector.extract_strided_slice %342 {offsets = [1, 0], sizes = [1, 32], strides = [1, 1]} : vector<2x32xf32> to vector<1x32xf32>
    %377 = tpu.concatenate %361, %362, %363, %364, %365, %366, %367, %368, %369, %370, %371, %372, %373, %374, %375, %376 in 0 : vector<1x32xf32>, vector<1x32xf32>, vector<1x32xf32>, vector<1x32xf32>, vector<1x32xf32>, vector<1x32xf32>, vector<1x32xf32>, vector<1x32xf32>, vector<1x32xf32>, vector<1x32xf32>, vector<1x32xf32>, vector<1x32xf32>, vector<1x32xf32>, vector<1x32xf32>, vector<1x32xf32>, vector<1x32xf32> -> vector<16x32xf32>
    %c0_60 = arith.constant 0 : index
    %c0_61 = arith.constant 0 : index
    %378 = vector.load %arg11[%c0_60, %c0_61] : memref<16x32xf32, #tpu.memory_space<vmem>>, vector<16x32xf32>
    tpu.vector_store %arg11[%c0_60, %c0_61], %377 {strides = array<i32>} : memref<16x32xf32, #tpu.memory_space<vmem>>, vector<16x32xf32>,
    return
  }
}

</mosaic_0001>

<bundles_post_ra>
// kernel: encoder_forward.1
= control target key start
LH: loop header
LB: loop body
LE: loop exit
PB: predicated region body
PF: predicated region fallthrough
CT: control target
= control target key end

     0   :  { %18 = vsyncpa [#allocation3], 0  ;;  %v3078_v7 = vmov 0.0   ;;  %vm981_vm0 = vcmask 523264   ;;  %s4270_s0 = inlined_call_operand.vmem [shape: f32[16,64], index: 0, kind: input, shape index: {}]   ;;  %s4271_s1 = inlined_call_operand.vmem [shape: f32[64,256], index: 1, kind: input, shape index: {}]   ;;  %s4272_s2 = inlined_call_operand.vmem [shape: f32[64,256], index: 2, kind: input, shape index: {}]   ;;  %s4273_s3 = inlined_call_operand.vmem [shape: f32[1,256], index: 3, kind: input, shape index: {}]   ;;  %s4274_s4 = inlined_call_operand.vmem [shape: f32[64,256], index: 4, kind: input, shape index: {}]   ;;  %s4275_s5 = inlined_call_operand.vmem [shape: f32[288,24], index: 5, kind: input, shape index: {}]   ;;  %s4276_s6 = inlined_call_operand.vmem [shape: f32[288,8], index: 6, kind: input, shape index: {}]   ;;  %s4277_s7 = inlined_call_operand.vmem [shape: f32[144,32], index: 7, kind: input, shape index: {}]   ;;  %s4278_s8 = inlined_call_operand.vmem [shape: f32[24,32], index: 8, kind: input, shape index: {}]   ;;  %s4279_s9 = inlined_call_operand.vmem [shape: f32[8,32], index: 9, kind: input, shape index: {}]   ;;  %s4280_s10 = inlined_call_operand.hbm [shape: f32[16,32], index: 10, kind: output, shape index: {0}]   ;;  %s4281_s11 = inlined_call_operand.hbm [shape: f32[16,32], index: 11, kind: output, shape index: {1}]   ;;  %s4282_s12 = inlined_call_operand.vmem [shape: f32[288,32], index: 12, kind: output, shape index: {2}]  }
   0x1   :  { %v954_v0 = vld [vmem:[%s4271_s1 + $0x8] sm:$0xff]  ;;  %v956_v1 = vld [vmem:[%s4271_s1 + $0x18] sm:$0xff]  ;;  %v953_v2 = vld [vmem:[%s4271_s1] sm:$0xff]  ;;  %1052 = vmatprep.mubr.f32.mxu1 %v3078_v7 }
   0x2   :  { %v2658_v3 = vpack.c.bf16 %v956_v1, %v954_v0  ;;  %v955_v4 = vld [vmem:[%s4271_s1 + $0x10] sm:$0xff]  ;;  %v958_v5 = vld [vmem:[%s4271_s1 + $0x28] sm:$0xff]  ;;  %v960_v6 = vld [vmem:[%s4271_s1 + $0x38] sm:$0xff] }
   0x3   :  { %v2660_v8 = vpack.c.bf16 %v955_v4, %v953_v2  ;;  %v2662_v9 = vpack.c.bf16 %v960_v6, %v958_v5  ;;  %v957_v10 = vld [vmem:[%s4271_s1 + $0x20] sm:$0xff]  ;;  %v959_v11 = vld [vmem:[%s4271_s1 + $0x30] sm:$0xff]  ;;  %v962_v12 = vld [vmem:[%s4271_s1 + $0x48] sm:$0xff] }
   0x4   :  { %2659 = vmatprep.subr.bf16.mxu1 %v2658_v3  ;;  %v964_v13 = vld [vmem:[%s4271_s1 + $0x58] sm:$0xff]  ;;  %v2664_v14 = vpack.c.bf16 %v959_v11, %v957_v10  ;;  %v961_v16 = vld [vmem:[%s4271_s1 + $0x40] sm:$0xff]  ;;  %v963_v17 = vld [vmem:[%s4271_s1 + $0x50] sm:$0xff] }
   0x5   :  { %2661 = vmatpush1.bf16.msra.mxu1 %v2660_v8  ;;  %v2666_v15 = vpack.c.bf16 %v964_v13, %v962_v12  ;;  %v966_v18 = vld [vmem:[%s4271_s1 + $0x68] sm:$0xff]  ;;  %v968_v19 = vld [vmem:[%s4271_s1 + $0x78] sm:$0xff]  ;;  %v2668_v20 = vpack.c.bf16 %v963_v17, %v961_v16  ;;  %v965_v22 = vld [vmem:[%s4271_s1 + $0x60] sm:$0xff] }
   0x6   :  { %2663 = vmatprep.subr.bf16.mxu1 %v2662_v9  ;;  %v2670_v21 = vpack.c.bf16 %v968_v19, %v966_v18  ;;  %v967_v23 = vld [vmem:[%s4271_s1 + $0x70] sm:$0xff]  ;;  %v1066_v24 = vld [vmem:[%s4272_s2 + $0x8] sm:$0xff]  ;;  %v1068_v25 = vld [vmem:[%s4272_s2 + $0x18] sm:$0xff] }
   0x7   :  { %v2672_v26 = vpack.c.bf16 %v967_v23, %v965_v22  ;;  %v2674_v27 = vpack.c.bf16 %v1068_v25, %v1066_v24  ;;  %v1065_v28 = vld [vmem:[%s4272_s2] sm:$0xff]  ;;  %v1067_v29 = vld [vmem:[%s4272_s2 + $0x10] sm:$0xff]  ;;  %v1070_v30 = vld [vmem:[%s4272_s2 + $0x28] sm:$0xff] }
   0x8   :  { %v1072_v31 = vld [vmem:[%s4272_s2 + $0x38] sm:$0xff]  ;;  %v951_v32 = vld [vmem:[%s4270_s0] sm:$0xff]  ;;  %v2676_v33 = vpack.c.bf16 %v1067_v29, %v1065_v28  ;;  %v1071_v36 = vld [vmem:[%s4272_s2 + $0x30] sm:$0xff] }
   0x9   :  { %2665 = vmatpush1.bf16.msra.mxu1 %v2664_v14  ;;  %v2678_v34 = vpack.c.bf16 %v1072_v31, %v1070_v30  ;;  %v1069_v35 = vld [vmem:[%s4272_s2 + $0x20] sm:$0xff] }
   0xa   :  { %2667 = vmatprep.subr.bf16.mxu1 %v2666_v15 }
   0xd   :  { %2669 = vmatpush1.bf16.msra.mxu1 %v2668_v20 }
   0xe   :  { %2671 = vmatprep.subr.bf16.mxu1 %v2670_v21 }
  0x11   :  { %2673 = vmatpush1.bf16.msra.mxu1 %v2672_v26 }
  0x12   :  { %2675 = vmatprep.subr.bf16.mxu1 %v2674_v27 }
  0x13   :  { %19 = vsyncpa [#allocation5], 0  ;;  %v1074_v37 = vld [vmem:[%s4272_s2 + $0x48] sm:$0xff]  ;;  %v1076_v38 = vld [vmem:[%s4272_s2 + $0x58] sm:$0xff]  ;;  %v2680_v40 = vpack.c.bf16 %v1071_v36, %v1069_v35  ;;  %v971_v12 = vlaneseq  ;;  %vm1164_vm1 = vcmask 1040384   ;;  %vm116_vm2 = vcmask 64512  }
  0x14   :  { %2435 = vmatmul.mubr.msk.f32.vlgmr.msra.gmra.mrb[0].mxu1 %vm981_vm0, %v951_v32  ;;  %v952_v39 = vld [vmem:[%s4270_s0 + $0x8] sm:$0xff]  ;;  %v2682_v41 = vpack.c.bf16 %v1076_v38, %v1074_v37  ;;  %v1073_v42 = vld [vmem:[%s4272_s2 + $0x40] sm:$0xff]  ;;  %v1075_v43 = vld [vmem:[%s4272_s2 + $0x50] sm:$0xff]  ;;  %vm470_vm3 = vcmask 195584   ;;  %s3081_s29 = smov 32   ;;  %vm914_vm4 = vcmask 261120  }
  0x15   :  { %2677 = vmatpush1.bf16.msra.mxu1 %v2676_v33  ;;  %1058 = vmatprep.mubr.f32.mxu1 %v3078_v7  ;;  %v1078_v44 = vld [vmem:[%s4272_s2 + $0x68] sm:$0xff]  ;;  %v1080_v45 = vld [vmem:[%s4272_s2 + $0x78] sm:$0xff]  ;;  %v2684_v46 = vpack.c.bf16 %v1075_v43, %v1073_v42  ;;  %v1077_v48 = vld [vmem:[%s4272_s2 + $0x60] sm:$0xff]  ;;  %v972_v13 = vshrl.u32 %v971_v12, 7  ;;  %vm2146_vm5 = vcmask 130048   ;;  %vm2254_vm6 = vcmask 1041408  }
  0x16   :  { %2679 = vmatprep.subr.bf16.mxu1 %v2678_v34  ;;  %v2686_v47 = vpack.c.bf16 %v1080_v45, %v1078_v44  ;;  %v1079_v49 = vld [vmem:[%s4272_s2 + $0x70] sm:$0xff]  ;;  %v1328_v50 = vld [vmem:[%s4274_s4 + $0x8] sm:$0xff]  ;;  %v1330_v51 = vld [vmem:[%s4274_s4 + $0x18] sm:$0xff]  ;;  %vm2256_vm7 = vcmask 1042432   ;;  %vm2258_vm8 = vcmask 1043456   ;;  %vm2260_vm9 = vcmask 1044480  }
  0x17   :  { %v2688_v52 = vpack.c.bf16 %v1079_v49, %v1077_v48  ;;  %v3264_v53 = vpack.c.bf16 %v1330_v51, %v1328_v50  ;;  %v1327_v54 = vld [vmem:[%s4274_s4] sm:$0xff]  ;;  %v1329_v55 = vld [vmem:[%s4274_s4 + $0x10] sm:$0xff]  ;;  %v1332_v56 = vld [vmem:[%s4274_s4 + $0x28] sm:$0xff]  ;;  %v973_v14 = vsub.s32 0, %v972_v13  ;;  %v977_v16 = vsub.s32 1, %v972_v13 }
  0x18   :  { %2436 = vmatmul.mubr.msk.f32.gmra.mrb[2].mxu1 %vm981_vm0, %v952_v39  ;;  %v1334_v57 = vld [vmem:[%s4274_s4 + $0x38] sm:$0xff]  ;;  %v3278_v58 = vpack.c.bf16 %v1329_v55, %v1327_v54  ;;  %v1331_v60 = vld [vmem:[%s4274_s4 + $0x20] sm:$0xff]  ;;  %v1333_v61 = vld [vmem:[%s4274_s4 + $0x30] sm:$0xff]  ;;  %vm2262_vm10 = vcmask 1045504   ;;  %vm2264_vm11 = vcmask 1046528  }
  0x19   :  { %2681 = vmatpush1.bf16.msra.mxu1 %v2680_v40  ;;  %1145 = vmatprep.mubr.f32.mxu1 %v3078_v7  ;;  %v3281_v59 = vpack.c.bf16 %v1334_v57, %v1332_v56  ;;  %v1336_v62 = vld [vmem:[%s4274_s4 + $0x48] sm:$0xff]  ;;  %v1338_v63 = vld [vmem:[%s4274_s4 + $0x58] sm:$0xff]  ;;  %v3298_v0 = vpack.c.bf16 %v1333_v61, %v1331_v60  ;;  %v1335_v2 = vld [vmem:[%s4274_s4 + $0x40] sm:$0xff] }
  0x1a   :  { %2683 = vmatprep.subr.bf16.mxu1 %v2682_v41  ;;  %v3301_v1 = vpack.c.bf16 %v1338_v63, %v1336_v62  ;;  %v1337_v3 = vld [vmem:[%s4274_s4 + $0x50] sm:$0xff]  ;;  %v1340_v4 = vld [vmem:[%s4274_s4 + $0x68] sm:$0xff]  ;;  %v1342_v5 = vld [vmem:[%s4274_s4 + $0x78] sm:$0xff] }
  0x1b   :  { %v3317_v6 = vpack.c.bf16 %v1337_v3, %v1335_v2  ;;  %v3321_v8 = vpack.c.bf16 %v1342_v5, %v1340_v4  ;;  %v1339_v9 = vld [vmem:[%s4274_s4 + $0x60] sm:$0xff]  ;;  %v1341_v10 = vld [vmem:[%s4274_s4 + $0x70] sm:$0xff] }
  0x1c   :  { %v3330_v11 = vpack.c.bf16 %v1341_v10, %v1339_v9  ;;  %v969_v15 = vld [vmem:[%s4273_s3] sm:$0x3]  ;;  %s3079_s3 = smov 64  }
  0x1d   :  { %2685 = vmatpush1.bf16.msra.mxu1 %v2684_v46  ;;  %v974_v17 = vrot.slane %v969_v15, %v973_v14  ;;  %v978_v18 = vrot.slane %v969_v15, %v977_v16 }
  0x1e   :  { %2687 = vmatprep.subr.bf16.mxu1 %v2686_v47 }
  0x21   :  { %2689 = vmatpush1.bf16.msra.mxu1 %v2688_v52 }
  0x22   :  { %2691 = vmatprep.subr.bf16.mxu1 %v3264_v53 }
  0x24   :  { %2437 = vmatmul.mubr.msk.f32.vlgmr.msra.gmra.mrb[4].mxu1 %vm981_vm0, %v951_v32 }
  0x25   :  { %2693 = vmatpush1.bf16.msra.mxu1 %v3278_v58  ;;  %1151 = vmatprep.mubr.f32.mxu1 %v3078_v7 }
  0x26   :  { %2695 = vmatprep.subr.bf16.mxu1 %v3281_v59 }
  0x28   :  { %2438 = vmatmul.mubr.msk.f32.gmra.mrb[6].mxu1 %vm981_vm0, %v952_v39 }
  0x29   :  { %2697 = vmatpush1.bf16.msra.mxu1 %v3298_v0  ;;  %1410 = vmatprep.mubr.f32.mxu1 %v3078_v7 }
  0x2a   :  { %2699 = vmatprep.subr.bf16.mxu1 %v3301_v1 }
  0x2d   :  { %2701 = vmatpush1.bf16.msra.mxu1 %v3317_v6 }
  0x2e   :  { %2703 = vmatprep.subr.bf16.mxu1 %v3321_v8 }
  0x31   :  { %2705 = vmatpush1.bf16.msra.mxu1 %v3330_v11 }
  0x32   :  { %2707 = vmatprep.subr.bf16.mxu1 %v3264_v53 }
  0x34   :  { %1411 = vmatmul.mubr.f32.vlgmr.msra.gmra.mrb[8].mxu1 %v3078_v7 }
  0x35   :  { %2709 = vmatpush1.bf16.msra.mxu1 %v3278_v58  ;;  %1510 = vmatprep.mubr.f32.mxu1 %v3078_v7 }
  0x36   :  { %2711 = vmatprep.subr.bf16.mxu1 %v3281_v59 }
  0x39   :  { %2713 = vmatpush1.bf16.msra.mxu1 %v3298_v0 }
  0x3a   :  { %2715 = vmatprep.subr.bf16.mxu1 %v3301_v1 }
  0x3d   :  { %2717 = vmatpush1.bf16.msra.mxu1 %v3317_v6 }
  0x3e   :  { %2719 = vmatprep.subr.bf16.mxu1 %v3321_v8 }
  0x41   :  { %2721 = vmatpush1.bf16.msra.mxu1 %v3330_v11 }
  0x42   :  { %2723 = vmatprep.subr.bf16.mxu1 %v3264_v53 }
  0xe7   :  { %v1054_v19 = vpop.f32.mrb[0].mxu1 }
  0xe8   :  { %v1055_v20 = vadd.f32 %v1054_v19, %v974_v17  ;;  %v1056_v21 = vpop.f32.mrb[1].mxu1 }
  0xe9   :  { %v1057_v22 = vadd.f32 %v1056_v21, %v978_v18 }
  0xea   :  { %v1185_v23 = vrot.slane %v1055_v20, 1  ;;  %v1203_v24 = vrot.slane %v1055_v20, 2  ;;  %v1225_v25 = vrot.slane %v1055_v20, 3  ;;  %v1247_v26 = vrot.slane %v1055_v20, 4 }
  0xeb   :  { %v1060_v27 = vpop.f32.mrb[2].mxu1  ;;  %v1186_v28 = vrot.slane %v1057_v22, 1  ;;  %v1204_v29 = vrot.slane %v1057_v22, 2  ;;  %v1226_v30 = vrot.slane %v1057_v22, 3  ;;  %v1248_v31 = vrot.slane %v1057_v22, 4 }
  0xec   :  { %v1061_v32 = vadd.f32 %v1060_v27, %v974_v17  ;;  %v1062_v33 = vpop.f32.mrb[3].mxu1  ;;  %v1269_v34 = vrot.slane %v1055_v20, 5  ;;  %v1270_v35 = vrot.slane %v1057_v22, 5  ;;  %v1291_v36 = vrot.slane %v1055_v20, 6 }
  0xed   :  { %v1063_v37 = vadd.f32 %v1062_v33, %v978_v18  ;;  %v1292_v38 = vrot.slane %v1057_v22, 6  ;;  %v1309_v39 = vrot.slane %v1055_v20, 7  ;;  %v1310_v40 = vrot.slane %v1057_v22, 7 }
  0xee   :  { %v1160_v41 = vrot.slane %v1061_v32, 7  ;;  %v1189_v42 = vsel %vm1164_vm1, %v1185_v23, %v1061_v32  ;;  %v1207_v43 = vrot.slane %v1061_v32, 1  ;;  %v1229_v44 = vrot.slane %v1061_v32, 2 }
  0xef   :  { %v1161_v45 = vrot.slane %v1063_v37, 7  ;;  %v1190_v46 = vsel %vm1164_vm1, %v1186_v28, %v1063_v37  ;;  %v1208_v47 = vrot.slane %v1063_v37, 1  ;;  %v1230_v48 = vrot.slane %v1063_v37, 2 }
  0xf0   :  { %v1165_v49 = vsel %vm1164_vm1, %v1055_v20, %v1160_v41  ;;  %v1211_v50 = vsel %vm1164_vm1, %v1203_v24, %v1207_v43  ;;  %v1233_v51 = vsel %vm1164_vm1, %v1225_v25, %v1229_v44  ;;  %v1251_v52 = vrot.slane %v1061_v32, 3 }
  0xf1   :  { %v1166_v54 = vsel %vm1164_vm1, %v1057_v22, %v1161_v45  ;;  %v1212_v55 = vsel %vm1164_vm1, %v1204_v29, %v1208_v47  ;;  %v1234_v56 = vsel %vm1164_vm1, %v1226_v30, %v1230_v48  ;;  %v1252_v57 = vrot.slane %v1063_v37, 3 }
  0xf2   :  { %v3357_v60 = vsel %vm1164_vm1, %v1247_v26, %v1251_v52  ;;  %v1273_v61 = vrot.slane %v1061_v32, 4  ;;  %v1274_v62 = vrot.slane %v1063_v37, 4  ;;  %v1295_v63 = vrot.slane %v1061_v32, 5 }
  0xf3   :  { %v3360_v2 = vsel %vm1164_vm1, %v1248_v31, %v1252_v57  ;;  %v1296_v3 = vrot.slane %v1063_v37, 5  ;;  %v1313_v4 = vrot.slane %v1061_v32, 6  ;;  %v1314_v5 = vrot.slane %v1063_v37, 6 }
  0xf4   :  { %v1277_v9 = vsel %vm1164_vm1, %v1269_v34, %v1273_v61  ;;  %v1278_v10 = vsel %vm1164_vm1, %v1270_v35, %v1274_v62  ;;  %v1299_v12 = vsel %vm1164_vm1, %v1291_v36, %v1295_v63 }
  0xf5   :  { %v1300_v13 = vsel %vm1164_vm1, %v1292_v38, %v1296_v3  ;;  %v3367_v14 = vsel %vm1164_vm1, %v1309_v39, %v1313_v4  ;;  %v3370_v15 = vsel %vm1164_vm1, %v1310_v40, %v1314_v5 }
  0xf7   :  { %v1147_v16 = vpop.f32.mrb[4].mxu1 }
  0xf8   :  { %v3372_v17 = vpop.f32.mrb[5].mxu1  ;;  %v1169_v18 = vrot.slane %v1147_v16, 7  ;;  %v1191_v19 = vrot.slane %v1147_v16, 6  ;;  %v1213_v22 = vrot.slane %v1147_v16, 5  ;;  %v1235_v23 = vrot.slane %v1147_v16, 4 }
  0xf9   :  { %v1170_v20 = vrot.slane %v3372_v17, 7  ;;  %v1192_v21 = vrot.slane %v3372_v17, 6  ;;  %v1214_v24 = vrot.slane %v3372_v17, 5  ;;  %v1236_v25 = vrot.slane %v3372_v17, 4 }
  0xfa   :  { %v1257_v26 = vrot.slane %v1147_v16, 3  ;;  %v1258_v27 = vrot.slane %v3372_v17, 3  ;;  %v1279_v29 = vrot.slane %v1147_v16, 2  ;;  %v1280_v30 = vrot.slane %v3372_v17, 2 }
  0xfb   :  { %v1153_v28 = vpop.f32.mrb[6].mxu1  ;;  %v1301_v31 = vrot.slane %v1147_v16, 1  ;;  %v1302_v32 = vrot.slane %v3372_v17, 1 }
  0xfc   :  { %v1155_v33 = vpop.f32.mrb[7].mxu1  ;;  %v1175_v34 = vrot.slane %v1153_v28, 6  ;;  %v1195_v35 = vrot.slane %v1153_v28, 5  ;;  %v1217_v36 = vrot.slane %v1153_v28, 4  ;;  %v1239_v37 = vrot.slane %v1153_v28, 3 }
  0xfd   :  { %v1176_v38 = vrot.slane %v1155_v33, 6  ;;  %v1196_v39 = vrot.slane %v1155_v33, 5  ;;  %v1218_v40 = vrot.slane %v1155_v33, 4  ;;  %v1240_v41 = vrot.slane %v1155_v33, 3 }
  0xfe   :  { %v1179_v43 = vsel %vm1164_vm1, %v1169_v18, %v1175_v34  ;;  %v1199_v44 = vsel %vm1164_vm1, %v1191_v19, %v1195_v35  ;;  %v1221_v45 = vsel %vm1164_vm1, %v1213_v22, %v1217_v36  ;;  %v1243_v47 = vsel %vm1164_vm1, %v1235_v23, %v1239_v37 }
  0xff   :  { %v1181_v48 = vadd.f32 %v1179_v43, %v1165_v49  ;;  %v1180_v52 = vsel %vm1164_vm1, %v1170_v20, %v1176_v38  ;;  %v3386_v57 = vadd.f32 %v1199_v44, %v1189_v42  ;;  %v1200_v61 = vsel %vm1164_vm1, %v1192_v21, %v1196_v39 }
 0x100   :  { %v1182_v62 = vadd.f32 %v1180_v52, %v1166_v54  ;;  %v3389_v63 = vadd.f32 %v1200_v61, %v1190_v46  ;;  %v3391_v3 = vadd.f32 %v1221_v45, %v1211_v50  ;;  %v1222_v4 = vsel %vm1164_vm1, %v1214_v24, %v1218_v40 }
 0x101   :  { %v3394_v5 = vadd.f32 %v1222_v4, %v1212_v55  ;;  %v3396_v18 = vadd.f32 %v1243_v47, %v1233_v51  ;;  %v1244_v19 = vsel %vm1164_vm1, %v1236_v25, %v1240_v41  ;;  %v1261_v49 = vrot.slane %v1153_v28, 2 }
 0x102   :  { %v3399_v22 = vadd.f32 %v1244_v19, %v1234_v56  ;;  %v1262_v42 = vrot.slane %v1155_v33, 2  ;;  %v1283_v20 = vrot.slane %v1153_v28, 1  ;;  %v1284_v23 = vrot.slane %v1155_v33, 1 }
 0x103   :  { %v1265_v54 = vsel %vm1164_vm1, %v1257_v26, %v1261_v49  ;;  %v1305_v46 = vsel %vm1164_vm1, %v1301_v31, %v1153_v28  ;;  %v1306_v50 = vsel %vm1164_vm1, %v1302_v32, %v1155_v33  ;;  %v1319_v21 = vrot.slane %v1153_v28, 7 }
 0x104   :  { %v3405_v55 = vadd.f32 %v1265_v54, %v3357_v60  ;;  %v1266_v51 = vsel %vm1164_vm1, %v1258_v27, %v1262_v42  ;;  %v1287_v24 = vsel %vm1164_vm1, %v1279_v29, %v1283_v20  ;;  %v1288_v56 = vsel %vm1164_vm1, %v1280_v30, %v1284_v23 }
 0x105   :  { %v3411_v25 = vadd.f32 %v1266_v51, %v3360_v2  ;;  %v3413_v34 = vadd.f32 %v1287_v24, %v1277_v9  ;;  %v3415_v26 = vadd.f32 %v1288_v56, %v1278_v10  ;;  %v3417_v31 = vadd.f32 %v1305_v46, %v1299_v12 }
 0x106   :  { %v3419_v32 = vadd.f32 %v1306_v50, %v1300_v13  ;;  %v1323_v60 = vsel %vm1164_vm1, %v1147_v16, %v1319_v21  ;;  %v1320_v28 = vrot.slane %v1155_v33, 7 }
 0x107   :  { %v1412_v35 = vpop.f32.mrb[8].mxu1  ;;  %v3423_v27 = vadd.f32 %v1323_v60, %v3367_v14 }
 0x108   :  { %v1417_v29 = vadd.f32 %v1412_v35, %v1181_v48  ;;  %v1414_v30 = vpop.f32.mrb[9].mxu1  ;;  %v1324_v2 = vsel %vm1164_vm1, %v3372_v17, %v1320_v28 }
 0x109   :  { %v1418_v9 = vadd.f32 %v1414_v30, %v1182_v62  ;;  %v3428_v10 = vadd.f32 %v1324_v2, %v3370_v15 }
 0x10a   :  { %v2439_v12 = vmul.f32 -1.442695, %v1417_v29 }
 0x10b   :  { %v2440_v14 = vmul.f32 -1.442695, %v1418_v9 }
 0x10c   :  { %2862 = vpow2.f32 %v2439_v12 }
 0x10d   :  { %2864 = vtanh.f32 %v1418_v9 }
 0x116   :  { %v2863_v13 = vpop.eup %2862 }
 0x117   :  { %v1422_v36 = vadd.f32 1.0, %v2863_v13  ;;  %v2865_v16 = vpop.eup %2864 }
 0x119   :  { %2866 = vrcp.f32 %v1422_v36 }
 0x11a   :  { %2868 = vpow2.f32 %v2440_v14 }
 0x123   :  { %v2867_v33 = vpop.eup %2866 }
 0x124   :  { %v1433_v37 = vmul.f32 %v2867_v33, %v2865_v16  ;;  %v2869_v38 = vpop.eup %2868  ;;  %v1432_v39 = vmul.f32 0.0, %v2867_v33 }
 0x125   :  { %v1429_v17 = vadd.f32 1.0, %v2869_v38 }
 0x126   :  { %1435 = vrot.lane.b32.xlu0 %v1433_v37, %s3079_s3 }
 0x127   :  { %2870 = vrcp.f32 %v1429_v17 }
 0x131   :  { %v2871_v41 = vpop.eup %2870 }
 0x198   :  { %v1436_v40 = vpop.permute.xlu0 %1435 }
 0x199   :  { %v1438_v15 = vadd.f32 %v1436_v40, %v1432_v39 }
 0x19b   :  { %2872 = vtanh.f32 %v1438_v15 }
 0x1a5   :  { %v2873_v43 = vpop.eup %2872 }
 0x1a6   :  { %v3431_v44 = vmul.f32 %v2873_v43, %v2871_v41 }
 0x1a8   :  { %1442 = vrot.lane.b32.xlu0 %v3431_v44, %s3079_s3 }
 0x21a   :  { %v3435_v45 = vpop.permute.xlu0 %1442 }
 0x21b   :  { %2441 = vmatmul.mubr.msk.f32.vlgmr.msra.gmra.mrb[10].mxu1 %vm981_vm0, %v3435_v45 }
 0x21c   :  { %2725 = vmatpush1.bf16.msra.mxu1 %v3278_v58  ;;  %1610 = vmatprep.mubr.f32.mxu1 %v3078_v7 }
 0x21d   :  { %2727 = vmatprep.subr.bf16.mxu1 %v3281_v59 }
 0x220   :  { %2729 = vmatpush1.bf16.msra.mxu1 %v3298_v0 }
 0x221   :  { %2731 = vmatprep.subr.bf16.mxu1 %v3301_v1 }
 0x224   :  { %2733 = vmatpush1.bf16.msra.mxu1 %v3317_v6 }
 0x225   :  { %2735 = vmatprep.subr.bf16.mxu1 %v3321_v8 }
 0x228   :  { %2737 = vmatpush1.bf16.msra.mxu1 %v3330_v11 }
 0x229   :  { %2739 = vmatprep.subr.bf16.mxu1 %v3264_v53 }
 0x2ee   :  { %v1512_v47 = vpop.f32.mrb[10].mxu1 }
 0x2ef   :  { %v1517_v48 = vadd.f32 %v1512_v47, %v3386_v57  ;;  %v1514_v52 = vpop.f32.mrb[11].mxu1 }
 0x2f0   :  { %v1518_v61 = vadd.f32 %v1514_v52, %v3389_v63 }
 0x2f1   :  { %v2442_v62 = vmul.f32 -1.442695, %v1517_v48 }
 0x2f2   :  { %v2443_v23 = vmul.f32 -1.442695, %v1518_v61 }
 0x2f3   :  { %2874 = vpow2.f32 %v2442_v62 }
 0x2f4   :  { %2876 = vtanh.f32 %v1518_v61 }
 0x2fd   :  { %v2875_v4 = vpop.eup %2874 }
 0x2fe   :  { %v1522_v19 = vadd.f32 1.0, %v2875_v4  ;;  %v2877_v49 = vpop.eup %2876 }
 0x300   :  { %2878 = vrcp.f32 %v1522_v19 }
 0x301   :  { %2880 = vpow2.f32 %v2443_v23 }
 0x30a   :  { %v2879_v42 = vpop.eup %2878 }
 0x30b   :  { %v1533_v20 = vmul.f32 %v2879_v42, %v2877_v49  ;;  %v2881_v54 = vpop.eup %2880  ;;  %v1532_v50 = vmul.f32 %v2879_v42, %v1438_v15 }
 0x30c   :  { %v1529_v46 = vadd.f32 1.0, %v2881_v54 }
 0x30d   :  { %1535 = vrot.lane.b32.xlu1 %v1533_v20, %s3079_s3 }
 0x30e   :  { %2882 = vrcp.f32 %v1529_v46 }
 0x318   :  { %v2883_v63 = vpop.eup %2882 }
 0x37f   :  { %v1536_v57 = vpop.permute.xlu1 %1535 }
 0x380   :  { %v1538_v21 = vadd.f32 %v1536_v57, %v1532_v50 }
 0x382   :  { %2884 = vtanh.f32 %v1538_v21 }
 0x38c   :  { %v2885_v51 = vpop.eup %2884 }
 0x38d   :  { %v3451_v24 = vmul.f32 %v2885_v51, %v2883_v63 }
 0x38f   :  { %1542 = vrot.lane.b32.xlu1 %v3451_v24, %s3079_s3 }
 0x401   :  { %v3455_v56 = vpop.permute.xlu1 %1542 }
 0x402   :  { %2444 = vmatmul.mubr.msk.f32.vlgmr.msra.gmra.mrb[12].mxu1 %vm981_vm0, %v3455_v56 }
 0x403   :  { %2741 = vmatpush1.bf16.msra.mxu1 %v3278_v58  ;;  %1710 = vmatprep.mubr.f32.mxu1 %v3078_v7 }
 0x404   :  { %2743 = vmatprep.subr.bf16.mxu1 %v3281_v59 }
 0x407   :  { %2745 = vmatpush1.bf16.msra.mxu1 %v3298_v0 }
 0x408   :  { %2747 = vmatprep.subr.bf16.mxu1 %v3301_v1 }
 0x40b   :  { %2749 = vmatpush1.bf16.msra.mxu1 %v3317_v6 }
 0x40c   :  { %2751 = vmatprep.subr.bf16.mxu1 %v3321_v8 }
 0x40f   :  { %2753 = vmatpush1.bf16.msra.mxu1 %v3330_v11 }
 0x410   :  { %2755 = vmatprep.subr.bf16.mxu1 %v3264_v53 }
 0x4d5   :  { %v1612_v60 = vpop.f32.mrb[12].mxu1 }
 0x4d6   :  { %v1617_v28 = vadd.f32 %v1612_v60, %v3391_v3  ;;  %v1614_v35 = vpop.f32.mrb[13].mxu1 }
 0x4d7   :  { %v1618_v29 = vadd.f32 %v1614_v35, %v3394_v5 }
 0x4d8   :  { %v2445_v30 = vmul.f32 -1.442695, %v1617_v28 }
 0x4d9   :  { %v2446_v16 = vmul.f32 -1.442695, %v1618_v29 }
 0x4da   :  { %2886 = vpow2.f32 %v2445_v30 }
 0x4db   :  { %2888 = vtanh.f32 %v1618_v29 }
 0x4e4   :  { %v2887_v2 = vpop.eup %2886 }
 0x4e5   :  { %v1622_v9 = vadd.f32 1.0, %v2887_v2  ;;  %v2889_v12 = vpop.eup %2888 }
 0x4e7   :  { %2890 = vrcp.f32 %v1622_v9 }
 0x4e8   :  { %2892 = vpow2.f32 %v2446_v16 }
 0x4f1   :  { %v2891_v13 = vpop.eup %2890 }
 0x4f2   :  { %v1633_v36 = vmul.f32 %v2891_v13, %v2889_v12  ;;  %v2893_v33 = vpop.eup %2892  ;;  %v1632_v14 = vmul.f32 %v2891_v13, %v1538_v21 }
 0x4f3   :  { %v1629_v37 = vadd.f32 1.0, %v2893_v33 }
 0x4f4   :  { %1635 = vrot.lane.b32.xlu0 %v1633_v36, %s3079_s3 }
 0x4f5   :  { %2894 = vrcp.f32 %v1629_v37 }
 0x4ff   :  { %v2895_v5 = vpop.eup %2894 }
 0x566   :  { %v1636_v3 = vpop.permute.xlu0 %1635 }
 0x567   :  { %v1638_v38 = vadd.f32 %v1636_v3, %v1632_v14 }
 0x569   :  { %2896 = vtanh.f32 %v1638_v38 }
 0x573   :  { %v2897_v17 = vpop.eup %2896 }
 0x574   :  { %v3471_v39 = vmul.f32 %v2897_v17, %v2895_v5 }
 0x576   :  { %1642 = vrot.lane.b32.xlu1 %v3471_v39, %s3079_s3 }
 0x5e8   :  { %v3475_v40 = vpop.permute.xlu1 %1642 }
 0x5e9   :  { %2447 = vmatmul.mubr.msk.f32.vlgmr.msra.gmra.mrb[14].mxu1 %vm981_vm0, %v3475_v40 }
 0x5ea   :  { %2757 = vmatpush1.bf16.msra.mxu1 %v3278_v58  ;;  %1810 = vmatprep.mubr.f32.mxu1 %v3078_v7 }
 0x5eb   :  { %2759 = vmatprep.subr.bf16.mxu1 %v3281_v59 }
 0x5ee   :  { %2761 = vmatpush1.bf16.msra.mxu1 %v3298_v0 }
 0x5ef   :  { %2763 = vmatprep.subr.bf16.mxu1 %v3301_v1 }
 0x5f2   :  { %2765 = vmatpush1.bf16.msra.mxu1 %v3317_v6 }
 0x5f3   :  { %2767 = vmatprep.subr.bf16.mxu1 %v3321_v8 }
 0x5f6   :  { %2769 = vmatpush1.bf16.msra.mxu1 %v3330_v11 }
 0x5f7   :  { %2771 = vmatprep.subr.bf16.mxu1 %v3264_v53 }
 0x6bc   :  { %v1712_v15 = vpop.f32.mrb[14].mxu1 }
 0x6bd   :  { %v1717_v41 = vadd.f32 %v1712_v15, %v3396_v18  ;;  %v1714_v43 = vpop.f32.mrb[15].mxu1 }
 0x6be   :  { %v1718_v47 = vadd.f32 %v1714_v43, %v3399_v22 }
 0x6bf   :  { %v2448_v48 = vmul.f32 -1.442695, %v1717_v41 }
 0x6c0   :  { %v2449_v49 = vmul.f32 -1.442695, %v1718_v47 }
 0x6c1   :  { %2898 = vpow2.f32 %v2448_v48 }
 0x6c2   :  { %2900 = vtanh.f32 %v1718_v47 }
 0x6cb   :  { %v2899_v52 = vpop.eup %2898 }
 0x6cc   :  { %v1722_v61 = vadd.f32 1.0, %v2899_v52  ;;  %v2901_v62 = vpop.eup %2900 }
 0x6ce   :  { %2902 = vrcp.f32 %v1722_v61 }
 0x6cf   :  { %2904 = vpow2.f32 %v2449_v49 }
 0x6d8   :  { %v2903_v4 = vpop.eup %2902 }
 0x6d9   :  { %v1733_v19 = vmul.f32 %v2903_v4, %v2901_v62  ;;  %v2905_v42 = vpop.eup %2904  ;;  %v1732_v23 = vmul.f32 %v2903_v4, %v1638_v38 }
 0x6da   :  { %v1729_v20 = vadd.f32 1.0, %v2905_v42 }
 0x6db   :  { %1735 = vrot.lane.b32.xlu0 %v1733_v19, %s3079_s3 }
 0x6dc   :  { %2906 = vrcp.f32 %v1729_v20 }
 0x6e6   :  { %v2907_v22 = vpop.eup %2906 }
 0x74d   :  { %v1736_v18 = vpop.permute.xlu0 %1735 }
 0x74e   :  { %v1738_v54 = vadd.f32 %v1736_v18, %v1732_v23 }
 0x750   :  { %2908 = vtanh.f32 %v1738_v54 }
 0x75a   :  { %v2909_v46 = vpop.eup %2908 }
 0x75b   :  { %v3491_v50 = vmul.f32 %v2909_v46, %v2907_v22  ;;  %v79_v22 = vld [vmem:[%s4276_s6] sm:$0xff]  ;;  %v80_v46 = vld [vmem:[%s4276_s6 + $0x8] sm:$0xff] }
 0x75c   :  { %2540 = vmatprep.mubr.msk.f32.mxu0 %vm116_vm2, %v79_v22  ;;  %v114_v22 = vld [vmem:[%s4276_s6 + $0x118] sm:$0xff] }
 0x75d   :  { %1742 = vrot.lane.b32.xlu1 %v3491_v50, %s3079_s3 }
 0x7cf   :  { %v3495_v57 = vpop.permute.xlu1 %1742 }
 0x7d0   :  { %2450 = vmatmul.mubr.msk.f32.vlgmr.msra.gmra.mrb[16].mxu1 %vm981_vm0, %v3495_v57 }
 0x7d1   :  { %2773 = vmatpush1.bf16.msra.mxu1 %v3278_v58  ;;  %1910 = vmatprep.mubr.f32.mxu1 %v3078_v7 }
 0x7d2   :  { %2775 = vmatprep.subr.bf16.mxu1 %v3281_v59 }
 0x7d5   :  { %2777 = vmatpush1.bf16.msra.mxu1 %v3298_v0 }
 0x7d6   :  { %2779 = vmatprep.subr.bf16.mxu1 %v3301_v1 }
 0x7d9   :  { %2781 = vmatpush1.bf16.msra.mxu1 %v3317_v6 }
 0x7da   :  { %2783 = vmatprep.subr.bf16.mxu1 %v3321_v8 }
 0x7dd   :  { %2785 = vmatpush1.bf16.msra.mxu1 %v3330_v11 }
 0x7de   :  { %2787 = vmatprep.subr.bf16.mxu1 %v3264_v53 }
 0x8a3   :  { %v1812_v21 = vpop.f32.mrb[16].mxu1 }
 0x8a4   :  { %v1817_v63 = vadd.f32 %v1812_v21, %v3405_v55  ;;  %v1814_v51 = vpop.f32.mrb[17].mxu1  ;;  %v81_v21 = vld [vmem:[%s4276_s6 + $0x10] sm:$0xff] }
 0x8a5   :  { %v1818_v60 = vadd.f32 %v1814_v51, %v3411_v25  ;;  %v83_v51 = vld [vmem:[%s4276_s6 + $0x20] sm:$0xff] }
 0x8a6   :  { %v2451_v28 = vmul.f32 -1.442695, %v1817_v63  ;;  %v82_v63 = vld [vmem:[%s4276_s6 + $0x18] sm:$0xff] }
 0x8a7   :  { %v2452_v12 = vmul.f32 -1.442695, %v1818_v60 }
 0x8a8   :  { %2910 = vpow2.f32 %v2451_v28  ;;  %v85_v28 = vld [vmem:[%s4276_s6 + $0x30] sm:$0xff] }
 0x8a9   :  { %2912 = vtanh.f32 %v1818_v60  ;;  %v84_v60 = vld [vmem:[%s4276_s6 + $0x28] sm:$0xff] }
 0x8b2   :  { %v2911_v35 = vpop.eup %2910 }
 0x8b3   :  { %v1822_v29 = vadd.f32 1.0, %v2911_v35  ;;  %v2913_v30 = vpop.eup %2912  ;;  %v76_v35 = vld [vmem:[%s4278_s8] sm:$0xff] }
 0x8b5   :  { %2914 = vrcp.f32 %v1822_v29  ;;  %v86_v29 = vld [vmem:[%s4276_s6 + $0x38] sm:$0xff] }
 0x8b6   :  { %2916 = vpow2.f32 %v2452_v12  ;;  %v78_v12 = vld [vmem:[%s4278_s8 + $0x10] sm:$0xff] }
 0x8bf   :  { %v2915_v2 = vpop.eup %2914 }
 0x8c0   :  { %v1833_v9 = vmul.f32 %v2915_v2, %v2913_v30  ;;  %v2917_v13 = vpop.eup %2916  ;;  %v1832_v16 = vmul.f32 %v2915_v2, %v1738_v54  ;;  %v115_v54 = vld [vmem:[%s4279_s9] sm:$0xff]  ;;  %v77_v30 = vld [vmem:[%s4278_s8 + $0x8] sm:$0xff] }
 0x8c1   :  { %v1829_v36 = vadd.f32 1.0, %v2917_v13  ;;  %2538 = vmatprep.subr.mxu0 %v115_v54  ;;  %v87_v2 = vld [vmem:[%s4276_s6 + $0x40] sm:$0xff]  ;;  %v88_v13 = vld [vmem:[%s4276_s6 + $0x48] sm:$0xff] }
 0x8c2   :  { %1835 = vrot.lane.b32.xlu0 %v1833_v9, %s3079_s3  ;;  %2539 = vmatpush3.msra.mxu0 %v115_v54  ;;  %v2654_v9 = vpack.c.bf16 %v77_v30, %v76_v35  ;;  %v113_v54 = vld [vmem:[%s4276_s6 + $0x110] sm:$0xff] }
 0x8c3   :  { %2918 = vrcp.f32 %v1829_v36  ;;  %2541 = vmatmul.mubr.msk.f32.vlgmr.msra.gmra.mrb[0].mxu0 %vm116_vm2, %v80_v46  ;;  %v89_v36 = vld [vmem:[%s4276_s6 + $0x50] sm:$0xff]  ;;  %v40_v46 = vld [vmem:[%s4275_s5] sm:$0xff] }
 0x8c4   :  { %2543 = vmatprep.mubr.msk.f32.mxu0 %vm116_vm2, %v81_v21  ;;  %2655 = vmatprep.subr.bf16.mxu0 %v2654_v9  ;;  %v41_v21 = vld [vmem:[%s4275_s5 + $0x8] sm:$0xff] }
 0x8c5   :  { %2657 = vmatpush3.bf16.msra.mxu0 %v2654_v9 }
 0x8c6   :  { %2598 = vmatprep.subr.mxu0 %v78_v12 }
 0x8c7   :  { %2544 = vmatmul.mubr.msk.f32.gmra.mrb[2].mxu0 %vm116_vm2, %v82_v63  ;;  %v42_v63 = vld [vmem:[%s4275_s5 + $0x10] sm:$0xff] }
 0x8c8   :  { %2546 = vmatprep.mubr.msk.f32.mxu0 %vm116_vm2, %v83_v51  ;;  %v43_v51 = vld [vmem:[%s4275_s5 + $0x18] sm:$0xff] }
 0x8c9   :  { %2599 = vmatpush3.msra.mxu0 %v78_v12 }
 0x8ca   :  { %2803 = vmatprep.subr.bf16.mxu0 %v3264_v53  ;;  %v94_v53 = vld [vmem:[%s4276_s6 + $0x78] sm:$0xff] }
 0x8cb   :  { %2547 = vmatmul.mubr.msk.f32.gmra.mrb[4].mxu0 %vm116_vm2, %v84_v60  ;;  %v44_v60 = vld [vmem:[%s4275_s5 + $0x20] sm:$0xff] }
 0x8cc   :  { %2549 = vmatprep.mubr.msk.f32.mxu0 %vm116_vm2, %v85_v28  ;;  %v45_v28 = vld [vmem:[%s4275_s5 + $0x28] sm:$0xff] }
 0x8cd   :  { %v2919_v25 = vpop.eup %2918 }
 0x8cf   :  { %2550 = vmatmul.mubr.msk.f32.gmra.mrb[6].mxu0 %vm116_vm2, %v86_v29 }
 0x8d0   :  { %2552 = vmatprep.mubr.msk.f32.mxu0 %vm116_vm2, %v87_v2 }
 0x8d3   :  { %2553 = vmatmul.mubr.msk.f32.gmra.mrb[8].mxu0 %vm116_vm2, %v88_v13  ;;  %v53_v13 = vld [vmem:[%s4275_s5 + $0x68] sm:$0xff] }
 0x8d4   :  { %2555 = vmatprep.mubr.msk.f32.mxu0 %vm116_vm2, %v89_v36 }
 0x934   :  { %v1836_v55 = vpop.permute.xlu0 %1835 }
 0x935   :  { %v1838_v33 = vadd.f32 %v1836_v55, %v1832_v16  ;;  %v90_v16 = vld [vmem:[%s4276_s6 + $0x58] sm:$0xff]  ;;  %v91_v55 = vld [vmem:[%s4276_s6 + $0x60] sm:$0xff] }
 0x936   :  { %2556 = vmatmul.mubr.msk.f32.gmra.mrb[10].mxu0 %vm116_vm2, %v90_v16  ;;  %v54_v16 = vld [vmem:[%s4275_s5 + $0x70] sm:$0xff] }
 0x937   :  { %2920 = vtanh.f32 %v1838_v33  ;;  %2558 = vmatprep.mubr.msk.f32.mxu0 %vm116_vm2, %v91_v55 }
 0x941   :  { %v2921_v37 = vpop.eup %2920 }
 0x942   :  { %v3511_v14 = vmul.f32 %v2921_v37, %v2919_v25  ;;  %v93_v25 = vld [vmem:[%s4276_s6 + $0x70] sm:$0xff]  ;;  %v95_v37 = vld [vmem:[%s4276_s6 + $0x80] sm:$0xff] }
 0x944   :  { %1842 = vrot.lane.b32.xlu1 %v3511_v14, %s3079_s3 }
 0x9b6   :  { %v3515_v3 = vpop.permute.xlu1 %1842 }
 0x9b7   :  { %2453 = vmatmul.mubr.msk.f32.vlgmr.msra.gmra.mrb[18].mxu1 %vm981_vm0, %v3515_v3 }
 0x9b8   :  { %2789 = vmatpush1.bf16.msra.mxu1 %v3278_v58  ;;  %2010 = vmatprep.mubr.f32.mxu1 %v3078_v7 }
 0x9b9   :  { %2791 = vmatprep.subr.bf16.mxu1 %v3281_v59 }
 0x9bc   :  { %2793 = vmatpush1.bf16.msra.mxu1 %v3298_v0 }
 0x9bd   :  { %2795 = vmatprep.subr.bf16.mxu1 %v3301_v1 }
 0x9c0   :  { %2797 = vmatpush1.bf16.msra.mxu1 %v3317_v6 }
 0x9c1   :  { %2799 = vmatprep.subr.bf16.mxu1 %v3321_v8 }
 0x9c4   :  { %2801 = vmatpush1.bf16.msra.mxu1 %v3330_v11 }
 0xa8a   :  { %v1912_v38 = vpop.f32.mrb[18].mxu1 }
 0xa8b   :  { %v1917_v5 = vadd.f32 %v1912_v38, %v3413_v34  ;;  %v1914_v17 = vpop.f32.mrb[19].mxu1  ;;  %v96_v38 = vld [vmem:[%s4276_s6 + $0x88] sm:$0xff] }
 0xa8c   :  { %v1918_v15 = vadd.f32 %v1914_v17, %v3415_v26  ;;  %v98_v17 = vld [vmem:[%s4276_s6 + $0x98] sm:$0xff] }
 0xa8d   :  { %v2454_v41 = vmul.f32 -1.442695, %v1917_v5  ;;  %v97_v5 = vld [vmem:[%s4276_s6 + $0x90] sm:$0xff] }
 0xa8e   :  { %v2455_v62 = vmul.f32 -1.442695, %v1918_v15 }
 0xa8f   :  { %2922 = vpow2.f32 %v2454_v41  ;;  %v100_v41 = vld [vmem:[%s4276_s6 + $0xa8] sm:$0xff] }
 0xa90   :  { %2924 = vtanh.f32 %v1918_v15  ;;  %v99_v15 = vld [vmem:[%s4276_s6 + $0xa0] sm:$0xff] }
 0xa99   :  { %v2923_v43 = vpop.eup %2922 }
 0xa9a   :  { %v1922_v47 = vadd.f32 1.0, %v2923_v43  ;;  %v2925_v48 = vpop.eup %2924  ;;  %v101_v43 = vld [vmem:[%s4276_s6 + $0xb0] sm:$0xff] }
 0xa9c   :  { %2926 = vrcp.f32 %v1922_v47  ;;  %v102_v47 = vld [vmem:[%s4276_s6 + $0xb8] sm:$0xff] }
 0xa9d   :  { %2928 = vpow2.f32 %v2455_v62  ;;  %v106_v62 = vld [vmem:[%s4276_s6 + $0xd8] sm:$0xff] }
 0xaa6   :  { %v2927_v52 = vpop.eup %2926 }
 0xaa7   :  { %v1933_v61 = vmul.f32 %v2927_v52, %v2925_v48  ;;  %v2929_v4 = vpop.eup %2928  ;;  %v1932_v49 = vmul.f32 %v2927_v52, %v1838_v33  ;;  %v92_v33 = vld [vmem:[%s4276_s6 + $0x68] sm:$0xff]  ;;  %v103_v48 = vld [vmem:[%s4276_s6 + $0xc0] sm:$0xff] }
 0xaa8   :  { %v1929_v19 = vadd.f32 1.0, %v2929_v4  ;;  %2559 = vmatmul.mubr.msk.f32.gmra.mrb[12].mxu0 %vm116_vm2, %v92_v33  ;;  %v104_v52 = vld [vmem:[%s4276_s6 + $0xc8] sm:$0xff]  ;;  %v107_v4 = vld [vmem:[%s4276_s6 + $0xe0] sm:$0xff]  ;;  %v55_v33 = vld [vmem:[%s4275_s5 + $0x78] sm:$0xff] }
 0xaa9   :  { %1935 = vrot.lane.b32.xlu0 %v1933_v61, %s3079_s3  ;;  %2561 = vmatprep.mubr.msk.f32.mxu0 %vm116_vm2, %v93_v25  ;;  %v105_v61 = vld [vmem:[%s4276_s6 + $0xd0] sm:$0xff]  ;;  %v56_v25 = vld [vmem:[%s4275_s5 + $0x80] sm:$0xff] }
 0xaaa   :  { %2930 = vrcp.f32 %v1929_v19  ;;  %v108_v19 = vld [vmem:[%s4276_s6 + $0xe8] sm:$0xff] }
 0xaac   :  { %2562 = vmatmul.mubr.msk.f32.gmra.mrb[14].mxu0 %vm116_vm2, %v94_v53  ;;  %v57_v53 = vld [vmem:[%s4275_s5 + $0x88] sm:$0xff] }
 0xaad   :  { %2564 = vmatprep.mubr.msk.f32.mxu0 %vm116_vm2, %v95_v37  ;;  %v58_v37 = vld [vmem:[%s4275_s5 + $0x90] sm:$0xff] }
 0xab0   :  { %2565 = vmatmul.mubr.msk.f32.gmra.mrb[16].mxu0 %vm116_vm2, %v96_v38  ;;  %v59_v38 = vld [vmem:[%s4275_s5 + $0x98] sm:$0xff] }
 0xab1   :  { %2567 = vmatprep.mubr.msk.f32.mxu0 %vm116_vm2, %v97_v5  ;;  %v60_v5 = vld [vmem:[%s4275_s5 + $0xa0] sm:$0xff] }
 0xab4   :  { %v2931_v26 = vpop.eup %2930  ;;  %2568 = vmatmul.mubr.msk.f32.gmra.mrb[18].mxu0 %vm116_vm2, %v98_v17  ;;  %v61_v17 = vld [vmem:[%s4275_s5 + $0xa8] sm:$0xff] }
 0xab5   :  { %2570 = vmatprep.mubr.msk.f32.mxu0 %vm116_vm2, %v99_v15  ;;  %v62_v15 = vld [vmem:[%s4275_s5 + $0xb0] sm:$0xff] }
 0xab8   :  { %2571 = vmatmul.mubr.msk.f32.gmra.mrb[20].mxu0 %vm116_vm2, %v100_v41  ;;  %v63_v41 = vld [vmem:[%s4275_s5 + $0xb8] sm:$0xff] }
 0xab9   :  { %2573 = vmatprep.mubr.msk.f32.mxu0 %vm116_vm2, %v101_v43  ;;  %v64_v43 = vld [vmem:[%s4275_s5 + $0xc0] sm:$0xff] }
 0xabc   :  { %2574 = vmatmul.mubr.msk.f32.gmra.mrb[22].mxu0 %vm116_vm2, %v102_v47  ;;  %v65_v47 = vld [vmem:[%s4275_s5 + $0xc8] sm:$0xff] }
 0xabd   :  { %2576 = vmatprep.mubr.msk.f32.mxu0 %vm116_vm2, %v103_v48  ;;  %v66_v48 = vld [vmem:[%s4275_s5 + $0xd0] sm:$0xff] }
 0xac0   :  { %2577 = vmatmul.mubr.msk.f32.gmra.mrb[24].mxu0 %vm116_vm2, %v104_v52  ;;  %v67_v52 = vld [vmem:[%s4275_s5 + $0xd8] sm:$0xff] }
 0xac1   :  { %2579 = vmatprep.mubr.msk.f32.mxu0 %vm116_vm2, %v105_v61  ;;  %v68_v61 = vld [vmem:[%s4275_s5 + $0xe0] sm:$0xff] }
 0xac4   :  { %2580 = vmatmul.mubr.msk.f32.gmra.mrb[26].mxu0 %vm116_vm2, %v106_v62  ;;  %v69_v62 = vld [vmem:[%s4275_s5 + $0xe8] sm:$0xff] }
 0xac5   :  { %2582 = vmatprep.mubr.msk.f32.mxu0 %vm116_vm2, %v107_v4  ;;  %v70_v4 = vld [vmem:[%s4275_s5 + $0xf0] sm:$0xff] }
 0xac8   :  { %2583 = vmatmul.mubr.msk.f32.gmra.mrb[28].mxu0 %vm116_vm2, %v108_v19  ;;  %v71_v19 = vld [vmem:[%s4275_s5 + $0xf8] sm:$0xff] }
 0xb1b   :  { %v1936_v34 = vpop.permute.xlu0 %1935 }
 0xb1c   :  { %v3530_v42 = vadd.f32 %v1936_v34, %v1932_v49  ;;  %v109_v49 = vld [vmem:[%s4276_s6 + $0xf0] sm:$0xff]  ;;  %v110_v34 = vld [vmem:[%s4276_s6 + $0xf8] sm:$0xff] }
 0xb1d   :  { %2585 = vmatprep.mubr.msk.f32.mxu0 %vm116_vm2, %v109_v49  ;;  %v72_v49 = vld [vmem:[%s4275_s5 + $0x100] sm:$0xff] }
 0xb1e   :  { %2932 = vtanh.f32 %v3530_v42  ;;  %2586 = vmatmul.mubr.msk.f32.gmra.mrb[30].mxu0 %vm116_vm2, %v110_v34  ;;  %v73_v34 = vld [vmem:[%s4275_s5 + $0x108] sm:$0xff] }
 0xb28   :  { %v2933_v20 = vpop.eup %2932 }
 0xb29   :  { %v3533_v23 = vmul.f32 %v2933_v20, %v2931_v26  ;;  %v111_v26 = vld [vmem:[%s4276_s6 + $0x100] sm:$0xff]  ;;  %v112_v20 = vld [vmem:[%s4276_s6 + $0x108] sm:$0xff] }
 0xb2a   :  { %2588 = vmatprep.mubr.msk.f32.mxu0 %vm116_vm2, %v111_v26  ;;  %v74_v26 = vld [vmem:[%s4275_s5 + $0x110] sm:$0xff] }
 0xb2b   :  { %1942 = vrot.lane.b32.xlu1 %v3533_v23, %s3079_s3  ;;  %2589 = vmatmul.mubr.msk.f32.gmra.mrb[32].mxu0 %vm116_vm2, %v112_v20  ;;  %v75_v20 = vld [vmem:[%s4275_s5 + $0x118] sm:$0xff] }
 0xb2c   :  { %2591 = vmatprep.mubr.msk.f32.mxu0 %vm116_vm2, %v113_v54 }
 0xb2f   :  { %2592 = vmatmul.mubr.msk.f32.gmra.mrb[34].mxu0 %vm116_vm2, %v114_v22 }
 0xb30   :  { %2600 = vmatprep.mubr.msk.f32.mxu0 %vm470_vm3, %v40_v46 }
 0xb33   :  { %2601 = vmatmul.mubr.msk.f32.vlgmr.msra.gmra.mrb[0].mxu0 %vm470_vm3, %v41_v21 }
 0xb34   :  { %2603 = vmatprep.mubr.msk.f32.mxu0 %vm470_vm3, %v42_v63  ;;  %2805 = vmatpush1.bf16.msra.mxu0 %v3278_v58  ;;  %v46_v58 = vld [vmem:[%s4275_s5 + $0x30] sm:$0xff] }
 0xb35   :  { %2807 = vmatprep.subr.bf16.mxu0 %v3281_v59  ;;  %v47_v59 = vld [vmem:[%s4275_s5 + $0x38] sm:$0xff] }
 0xb37   :  { %2604 = vmatmul.mubr.msk.f32.gmra.mrb[2].mxu0 %vm470_vm3, %v43_v51 }
 0xb38   :  { %2606 = vmatprep.mubr.msk.f32.mxu0 %vm470_vm3, %v44_v60  ;;  %2809 = vmatpush1.bf16.msra.mxu0 %v3298_v0 }
 0xb39   :  { %2811 = vmatprep.subr.bf16.mxu0 %v3301_v1 }
 0xb3b   :  { %2607 = vmatmul.mubr.msk.f32.gmra.mrb[4].mxu0 %vm470_vm3, %v45_v28 }
 0xb3c   :  { %2609 = vmatprep.mubr.msk.f32.mxu0 %vm470_vm3, %v46_v58  ;;  %2813 = vmatpush1.bf16.msra.mxu0 %v3317_v6  ;;  %v48_v6 = vld [vmem:[%s4275_s5 + $0x40] sm:$0xff] }
 0xb3d   :  { %2815 = vmatprep.subr.bf16.mxu0 %v3321_v8  ;;  %v49_v8 = vld [vmem:[%s4275_s5 + $0x48] sm:$0xff] }
 0xb3f   :  { %2610 = vmatmul.mubr.msk.f32.gmra.mrb[6].mxu0 %vm470_vm3, %v47_v59 }
 0xb40   :  { %2817 = vmatpush1.bf16.msra.mxu0 %v3330_v11  ;;  %v50_v11 = vld [vmem:[%s4275_s5 + $0x50] sm:$0xff]  ;;  %2612 = vmatprep.mubr.msk.f32.mxu0 %vm470_vm3, %v48_v6  ;;  %v3902_v6 = vld [vmem:[%s4277_s7 + $0x28] sm:$0xff] }
 0xb43   :  { %2613 = vmatmul.mubr.msk.f32.gmra.mrb[8].mxu0 %vm470_vm3, %v49_v8  ;;  %v3907_v8 = vld [vmem:[%s4277_s7 + $0x20] sm:$0xff] }
 0xb44   :  { %2615 = vmatprep.mubr.msk.f32.mxu0 %vm470_vm3, %v50_v11 }
 0xb9d   :  { %v3537_v18 = vpop.permute.xlu1 %1942 }
 0xb9e   :  { %2456 = vmatmul.mubr.msk.f32.vlgmr.msra.gmra.mrb[20].mxu1 %vm981_vm0, %v3537_v18 }
 0xc06   :  { %v2602_v59 = vpop.f32.mrb[0].mxu0 }
 0xc71   :  { %v2012_v0 = vpop.f32.mrb[20].mxu1 }
 0xc72   :  { %v2017_v35 = vadd.f32 %v2012_v0, %v3417_v31  ;;  %v2014_v1 = vpop.f32.mrb[21].mxu1  ;;  %v51_v31 = vld [vmem:[%s4275_s5 + $0x58] sm:$0xff] }
 0xc73   :  { %v3739_v29 = vadd.f32 %v2014_v1, %v3419_v32  ;;  %v52_v32 = vld [vmem:[%s4275_s5 + $0x60] sm:$0xff]  ;;  %2616 = vmatmul.mubr.msk.f32.gmra.mrb[10].mxu0 %vm470_vm3, %v51_v31  ;;  %s3080_s5 = smov 48   ;;  %v3895_v1 = vld [vmem:[%s4277_s7 + $0x10] sm:$0xff] }
 0xc74   :  { %v2457_v30 = vmul.f32 -1.442695, %v2017_v35  ;;  %2618 = vmatprep.mubr.msk.f32.mxu0 %vm470_vm3, %v52_v32 }
 0xc75   :  { %v2458_v54 = vmul.f32 -1.442695, %v3739_v29 }
 0xc76   :  { %2934 = vpow2.f32 %v2457_v30 }
 0xc77   :  { %2936 = vtanh.f32 %v3739_v29  ;;  %2619 = vmatmul.mubr.msk.f32.gmra.mrb[12].mxu0 %vm470_vm3, %v53_v13  ;;  %v3914_v13 = vld [vmem:[%s4277_s7 + $0x38] sm:$0xff] }
 0xc78   :  { %2621 = vmatprep.mubr.msk.f32.mxu0 %vm470_vm3, %v54_v16 }
 0xc7b   :  { %2622 = vmatmul.mubr.msk.f32.gmra.mrb[14].mxu0 %vm470_vm3, %v55_v33 }
 0xc7c   :  { %2624 = vmatprep.mubr.msk.f32.mxu0 %vm470_vm3, %v56_v25 }
 0xc7f   :  { %2625 = vmatmul.mubr.msk.f32.gmra.mrb[16].mxu0 %vm470_vm3, %v57_v53 }
 0xc80   :  { %v2935_v2 = vpop.eup %2934  ;;  %2627 = vmatprep.mubr.msk.f32.mxu0 %vm470_vm3, %v58_v37 }
 0xc81   :  { %v2022_v9 = vadd.f32 1.0, %v2935_v2  ;;  %v2937_v12 = vpop.eup %2936 }
 0xc83   :  { %2938 = vrcp.f32 %v2022_v9  ;;  %2628 = vmatmul.mubr.msk.f32.gmra.mrb[18].mxu0 %vm470_vm3, %v59_v38 }
 0xc84   :  { %2630 = vmatprep.mubr.msk.f32.mxu0 %vm470_vm3, %v60_v5  ;;  %2940 = vpow2.f32 %v2458_v54 }
 0xc87   :  { %2631 = vmatmul.mubr.msk.f32.gmra.mrb[20].mxu0 %vm470_vm3, %v61_v17 }
 0xc88   :  { %2633 = vmatprep.mubr.msk.f32.mxu0 %vm470_vm3, %v62_v15 }
 0xc8b   :  { %2634 = vmatmul.mubr.msk.f32.gmra.mrb[22].mxu0 %vm470_vm3, %v63_v41 }
 0xc8c   :  { %2636 = vmatprep.mubr.msk.f32.mxu0 %vm470_vm3, %v64_v43 }
 0xc8d   :  { %v2939_v36 = vpop.eup %2938 }
 0xc8e   :  { %v2033_v55 = vmul.f32 %v2939_v36, %v2937_v12  ;;  %v2941_v22 = vpop.eup %2940  ;;  %v2032_v21 = vmul.f32 %v2939_v36, %v3530_v42  ;;  %v3883_v42 = vld [vmem:[%s4277_s7] sm:$0xff]  ;;  %v3919_v36 = vld [vmem:[%s4277_s7 + $0x30] sm:$0xff] }
 0xc8f   :  { %2637 = vmatmul.mubr.msk.f32.gmra.mrb[24].mxu0 %vm470_vm3, %v65_v47  ;;  %v2029_v46 = vadd.f32 1.0, %v2941_v22  ;;  %v3958_v47 = vld [vmem:[%s4277_s7 + $0x48] sm:$0xff] }
 0xc90   :  { %2035 = vrot.lane.b32.xlu0 %v2033_v55, %s3079_s3  ;;  %2639 = vmatprep.mubr.msk.f32.mxu0 %vm470_vm3, %v66_v48  ;;  %v3963_v48 = vld [vmem:[%s4277_s7 + $0x40] sm:$0xff]  ;;  %v3982_v22 = vld [vmem:[%s4277_s7 + $0x68] sm:$0xff] }
 0xc91   :  { %2942 = vrcp.f32 %v2029_v46  ;;  %v3987_v46 = vld [vmem:[%s4277_s7 + $0x60] sm:$0xff] }
 0xc93   :  { %2640 = vmatmul.mubr.msk.f32.gmra.mrb[26].mxu0 %vm470_vm3, %v67_v52 }
 0xc94   :  { %2642 = vmatprep.mubr.msk.f32.mxu0 %vm470_vm3, %v68_v61 }
 0xc97   :  { %2643 = vmatmul.mubr.msk.f32.gmra.mrb[28].mxu0 %vm470_vm3, %v69_v62 }
 0xc98   :  { %2645 = vmatprep.mubr.msk.f32.mxu0 %vm470_vm3, %v70_v4 }
 0xc9b   :  { %2646 = vmatmul.mubr.msk.f32.gmra.mrb[30].mxu0 %vm470_vm3, %v71_v19  ;;  %v2943_v60 = vpop.eup %2942  ;;  %v3970_v19 = vld [vmem:[%s4277_s7 + $0x58] sm:$0xff] }
 0xc9c   :  { %2648 = vmatprep.mubr.msk.f32.mxu0 %vm470_vm3, %v72_v49  ;;  %v3975_v49 = vld [vmem:[%s4277_s7 + $0x50] sm:$0xff] }
 0xc9f   :  { %2649 = vmatmul.mubr.msk.f32.gmra.mrb[32].mxu0 %vm470_vm3, %v73_v34 }
 0xca0   :  { %2651 = vmatprep.mubr.msk.f32.mxu0 %vm470_vm3, %v74_v26 }
 0xca3   :  { %2652 = vmatmul.mubr.msk.f32.gmra.mrb[34].mxu0 %vm470_vm3, %v75_v20 }
 0xca4   :  { %2110 = vmatprep.mubr.f32.mxu0 %v3078_v7  ;;  %v3878_v7 = vld [vmem:[%s4277_s7 + $0x8] sm:$0xff] }
 0xca5   :  { %v843_v0 = vadd.f32 %v2602_v59, %v3878_v7  ;;  %v3994_v59 = vld [vmem:[%s4277_s7 + $0x78] sm:$0xff] }
 0xd02   :  { %v2036_v63 = vpop.permute.xlu0 %2035 }
 0xd03   :  { %v3858_v51 = vadd.f32 %v2036_v63, %v2032_v21 }
 0xd05   :  { %2944 = vtanh.f32 %v3858_v51 }
 0xd06   :  { %2946 = vtanh.f32 %v843_v0  ;;  %v3999_v0 = vld [vmem:[%s4277_s7 + $0x70] sm:$0xff] }
 0xd0f   :  { %v2945_v28 = vpop.eup %2944 }
 0xd10   :  { %v3861_v58 = vmul.f32 %v2945_v28, %v2943_v60  ;;  %v2947_v55 = vpop.eup %2946 }
 0xd11   :  { %916 = vst.msk [vmem:[%s4282_s12 + $0x8] sm:$0xff] %vm914_vm4, %v2947_v55 }
 0xd12   :  { %2042 = vrot.lane.b32.xlu1 %v3861_v58, %s3079_s3 }
 0xd16   :  { %2174 = vrot.lane.b32.xlu1 %v3451_v24, %s3080_s5 }
 0xd1a   :  { %2154 = vrot.lane.b32.xlu1 %v3533_v23, %s3080_s5 }
 0xd1e   :  { %2193 = vrot.lane.b32.xlu1 %v3533_v23, %s3081_s29  ;;  %v645_v23 = vpop.f32.mrb[1].mxu0 }
 0xd1f   :  { %v842_v35 = vadd.f32 %v3883_v42, %v645_v23  ;;  %v2605_v29 = vpop.f32.mrb[2].mxu0 }
 0xd20   :  { %v655_v2 = vpop.f32.mrb[3].mxu0 }
 0xd21   :  { %2948 = vtanh.f32 %v842_v35  ;;  %v844_v9 = vadd.f32 %v3895_v1, %v655_v2  ;;  %v2608_v11 = vpop.f32.mrb[4].mxu0 }
 0xd22   :  { %2164 = vrot.lane.b32.xlu1 %v3491_v50, %s3080_s5  ;;  %v847_v31 = vadd.f32 %v2608_v11, %v3902_v6  ;;  %v665_v32 = vpop.f32.mrb[5].mxu0  ;;  %v4010_v11 = vld [vmem:[%s4277_s7 + $0x88] sm:$0xff] }
 0xd23   :  { %v846_v12 = vadd.f32 %v3907_v8, %v665_v32  ;;  %v2611_v16 = vpop.f32.mrb[6].mxu0 }
 0xd24   :  { %v849_v33 = vadd.f32 %v2611_v16, %v3914_v13  ;;  %v675_v25 = vpop.f32.mrb[7].mxu0 }
 0xd25   :  { %v848_v37 = vadd.f32 %v3919_v36, %v675_v25  ;;  %v2614_v52 = vpop.f32.mrb[8].mxu0 }
 0xd26   :  { %2201 = vrot.lane.b32.xlu1 %v3491_v50, %s3081_s29  ;;  %v3890_v50 = vld [vmem:[%s4277_s7 + $0x18] sm:$0xff]  ;;  %v851_v61 = vadd.f32 %v2614_v52, %v3958_v47  ;;  %v685_v62 = vpop.f32.mrb[9].mxu0 }
 0xd27   :  { %v845_v30 = vadd.f32 %v2605_v29, %v3890_v50  ;;  %v850_v4 = vadd.f32 %v3963_v48, %v685_v62 }
 0xd29   :  { %2950 = vtanh.f32 %v845_v30 }
 0xd2a   :  { %2952 = vtanh.f32 %v844_v9 }
 0xd2b   :  { %2954 = vtanh.f32 %v847_v31  ;;  %v2949_v53 = vpop.eup %2948  ;;  %v4019_v31 = vld [vmem:[%s4277_s7 + $0x80] sm:$0xff] }
 0xd2c   :  { %2956 = vtanh.f32 %v846_v12  ;;  %915 = vst.msk [vmem:[%s4282_s12] sm:$0xff] %vm914_vm4, %v2949_v53 }
 0xd2d   :  { %2958 = vtanh.f32 %v849_v33 }
 0xd2e   :  { %2960 = vtanh.f32 %v848_v37 }
 0xd2f   :  { %2962 = vtanh.f32 %v851_v61 }
 0xd30   :  { %2964 = vtanh.f32 %v850_v4 }
 0xd33   :  { %v2951_v38 = vpop.eup %2950 }
 0xd34   :  { %v2953_v5 = vpop.eup %2952  ;;  %918 = vst.msk [vmem:[%s4282_s12 + $0x18] sm:$0xff] %vm914_vm4, %v2951_v38 }
 0xd35   :  { %917 = vst.msk [vmem:[%s4282_s12 + $0x10] sm:$0xff] %vm914_vm4, %v2953_v5  ;;  %v2955_v17 = vpop.eup %2954 }
 0xd36   :  { %v2957_v15 = vpop.eup %2956  ;;  %920 = vst.msk [vmem:[%s4282_s12 + $0x28] sm:$0xff] %vm914_vm4, %v2955_v17 }
 0xd37   :  { %919 = vst.msk [vmem:[%s4282_s12 + $0x20] sm:$0xff] %vm914_vm4, %v2957_v15  ;;  %v2959_v41 = vpop.eup %2958 }
 0xd38   :  { %v2961_v43 = vpop.eup %2960  ;;  %922 = vst.msk [vmem:[%s4282_s12 + $0x38] sm:$0xff] %vm914_vm4, %v2959_v41 }
 0xd39   :  { %921 = vst.msk [vmem:[%s4282_s12 + $0x30] sm:$0xff] %vm914_vm4, %v2961_v43  ;;  %v2963_v35 = vpop.eup %2962 }
 0xd3a   :  { %v2965_v2 = vpop.eup %2964  ;;  %924 = vst.msk [vmem:[%s4282_s12 + $0x48] sm:$0xff] %vm914_vm4, %v2963_v35 }
 0xd3b   :  { %923 = vst.msk [vmem:[%s4282_s12 + $0x40] sm:$0xff] %vm914_vm4, %v2965_v2 }
 0xd46   :  { %v2617_v34 = vpop.f32.mrb[10].mxu0 }
 0xd47   :  { %v853_v26 = vadd.f32 %v2617_v34, %v3970_v19  ;;  %v695_v20 = vpop.f32.mrb[11].mxu0 }
 0xd48   :  { %v852_v54 = vadd.f32 %v3975_v49, %v695_v20 }
 0xd49   :  { %2966 = vtanh.f32 %v853_v26 }
 0xd4a   :  { %2968 = vtanh.f32 %v852_v54  ;;  %v2620_v21 = vpop.f32.mrb[12].mxu0 }
 0xd4b   :  { %v855_v63 = vadd.f32 %v2620_v21, %v3982_v22  ;;  %v705_v60 = vpop.f32.mrb[13].mxu0 }
 0xd4c   :  { %v854_v28 = vadd.f32 %v3987_v46, %v705_v60 }
 0xd4d   :  { %2970 = vtanh.f32 %v855_v63 }
 0xd4e   :  { %2972 = vtanh.f32 %v854_v28  ;;  %v2623_v23 = vpop.f32.mrb[14].mxu0 }
 0xd4f   :  { %v857_v29 = vadd.f32 %v2623_v23, %v3994_v59  ;;  %v715_v30 = vpop.f32.mrb[15].mxu0 }
 0xd50   :  { %v856_v9 = vadd.f32 %v3999_v0, %v715_v30 }
 0xd51   :  { %2974 = vtanh.f32 %v857_v29 }
 0xd52   :  { %2976 = vtanh.f32 %v856_v9  ;;  %v2626_v32 = vpop.f32.mrb[16].mxu0 }
 0xd53   :  { %v2967_v12 = vpop.eup %2966  ;;  %v859_v16 = vadd.f32 %v2626_v32, %v4010_v11  ;;  %v725_v55 = vpop.f32.mrb[17].mxu0 }
 0xd54   :  { %v2969_v33 = vpop.eup %2968  ;;  %926 = vst.msk [vmem:[%s4282_s12 + $0x58] sm:$0xff] %vm914_vm4, %v2967_v12  ;;  %v858_v25 = vadd.f32 %v4019_v31, %v725_v55 }
 0xd55   :  { %925 = vst.msk [vmem:[%s4282_s12 + $0x50] sm:$0xff] %vm914_vm4, %v2969_v33  ;;  %2978 = vtanh.f32 %v859_v16 }
 0xd56   :  { %2980 = vtanh.f32 %v858_v25  ;;  %v2629_v53 = vpop.f32.mrb[18].mxu0 }
 0xd57   :  { %v2971_v37 = vpop.eup %2970  ;;  %v861_v38 = vadd.f32 %v2629_v53, %v3878_v7  ;;  %v735_v5 = vpop.f32.mrb[19].mxu0 }
 0xd58   :  { %v2973_v17 = vpop.eup %2972  ;;  %928 = vst.msk [vmem:[%s4282_s12 + $0x68] sm:$0xff] %vm914_vm4, %v2971_v37  ;;  %v860_v15 = vadd.f32 %v3883_v42, %v735_v5 }
 0xd59   :  { %927 = vst.msk [vmem:[%s4282_s12 + $0x60] sm:$0xff] %vm914_vm4, %v2973_v17  ;;  %2982 = vtanh.f32 %v861_v38 }
 0xd5a   :  { %2984 = vtanh.f32 %v860_v15  ;;  %v2632_v41 = vpop.f32.mrb[20].mxu0 }
 0xd5b   :  { %v2975_v43 = vpop.eup %2974  ;;  %v863_v7 = vadd.f32 %v2632_v41, %v3890_v50  ;;  %v745_v52 = vpop.f32.mrb[21].mxu0 }
 0xd5c   :  { %v2977_v61 = vpop.eup %2976  ;;  %930 = vst.msk [vmem:[%s4282_s12 + $0x78] sm:$0xff] %vm914_vm4, %v2975_v43  ;;  %v862_v42 = vadd.f32 %v3895_v1, %v745_v52 }
 0xd5d   :  { %929 = vst.msk [vmem:[%s4282_s12 + $0x70] sm:$0xff] %vm914_vm4, %v2977_v61  ;;  %2986 = vtanh.f32 %v863_v7 }
 0xd5e   :  { %2988 = vtanh.f32 %v862_v42  ;;  %v2635_v62 = vpop.f32.mrb[22].mxu0 }
 0xd5f   :  { %v2979_v4 = vpop.eup %2978  ;;  %v865_v50 = vadd.f32 %v2635_v62, %v3902_v6  ;;  %v755_v34 = vpop.f32.mrb[23].mxu0 }
 0xd60   :  { %v2981_v26 = vpop.eup %2980  ;;  %932 = vst.msk [vmem:[%s4282_s12 + $0x88] sm:$0xff] %vm914_vm4, %v2979_v4  ;;  %v864_v1 = vadd.f32 %v3907_v8, %v755_v34 }
 0xd61   :  { %931 = vst.msk [vmem:[%s4282_s12 + $0x80] sm:$0xff] %vm914_vm4, %v2981_v26  ;;  %2990 = vtanh.f32 %v865_v50 }
 0xd62   :  { %2992 = vtanh.f32 %v864_v1  ;;  %v2638_v20 = vpop.f32.mrb[24].mxu0 }
 0xd63   :  { %v2983_v54 = vpop.eup %2982  ;;  %v867_v6 = vadd.f32 %v2638_v20, %v3914_v13  ;;  %v765_v21 = vpop.f32.mrb[25].mxu0 }
 0xd64   :  { %v2985_v63 = vpop.eup %2984  ;;  %934 = vst.msk [vmem:[%s4282_s12 + $0x98] sm:$0xff] %vm914_vm4, %v2983_v54  ;;  %v866_v8 = vadd.f32 %v3919_v36, %v765_v21 }
 0xd65   :  { %933 = vst.msk [vmem:[%s4282_s12 + $0x90] sm:$0xff] %vm914_vm4, %v2985_v63  ;;  %2994 = vtanh.f32 %v867_v6 }
 0xd66   :  { %2996 = vtanh.f32 %v866_v8  ;;  %v2641_v60 = vpop.f32.mrb[26].mxu0 }
 0xd67   :  { %v2987_v28 = vpop.eup %2986  ;;  %v869_v13 = vadd.f32 %v2641_v60, %v3958_v47  ;;  %v775_v23 = vpop.f32.mrb[27].mxu0 }
 0xd68   :  { %v2989_v35 = vpop.eup %2988  ;;  %936 = vst.msk [vmem:[%s4282_s12 + $0xa8] sm:$0xff] %vm914_vm4, %v2987_v28  ;;  %v868_v36 = vadd.f32 %v3963_v48, %v775_v23 }
 0xd69   :  { %935 = vst.msk [vmem:[%s4282_s12 + $0xa0] sm:$0xff] %vm914_vm4, %v2989_v35  ;;  %2998 = vtanh.f32 %v869_v13 }
 0xd6a   :  { %3000 = vtanh.f32 %v868_v36  ;;  %v2644_v29 = vpop.f32.mrb[28].mxu0 }
 0xd6b   :  { %v2991_v30 = vpop.eup %2990  ;;  %v871_v47 = vadd.f32 %v2644_v29, %v3970_v19  ;;  %v785_v2 = vpop.f32.mrb[29].mxu0 }
 0xd6c   :  { %v2993_v9 = vpop.eup %2992  ;;  %938 = vst.msk [vmem:[%s4282_s12 + $0xb8] sm:$0xff] %vm914_vm4, %v2991_v30  ;;  %v870_v48 = vadd.f32 %v3975_v49, %v785_v2 }
 0xd6d   :  { %937 = vst.msk [vmem:[%s4282_s12 + $0xb0] sm:$0xff] %vm914_vm4, %v2993_v9  ;;  %3002 = vtanh.f32 %v871_v47 }
 0xd6e   :  { %3004 = vtanh.f32 %v870_v48  ;;  %v2647_v19 = vpop.f32.mrb[30].mxu0 }
 0xd6f   :  { %v2995_v12 = vpop.eup %2994  ;;  %v873_v16 = vadd.f32 %v2647_v19, %v3982_v22  ;;  %v795_v55 = vpop.f32.mrb[31].mxu0 }
 0xd70   :  { %v2997_v33 = vpop.eup %2996  ;;  %940 = vst.msk [vmem:[%s4282_s12 + $0xc8] sm:$0xff] %vm914_vm4, %v2995_v12  ;;  %v872_v49 = vadd.f32 %v3987_v46, %v795_v55 }
 0xd71   :  { %939 = vst.msk [vmem:[%s4282_s12 + $0xc0] sm:$0xff] %vm914_vm4, %v2997_v33  ;;  %3006 = vtanh.f32 %v873_v16 }
 0xd72   :  { %3008 = vtanh.f32 %v872_v49  ;;  %v2650_v25 = vpop.f32.mrb[32].mxu0 }
 0xd73   :  { %v2999_v53 = vpop.eup %2998  ;;  %v875_v22 = vadd.f32 %v2650_v25, %v3994_v59  ;;  %v805_v37 = vpop.f32.mrb[33].mxu0 }
 0xd74   :  { %v3001_v38 = vpop.eup %3000  ;;  %942 = vst.msk [vmem:[%s4282_s12 + $0xd8] sm:$0xff] %vm914_vm4, %v2999_v53  ;;  %v874_v46 = vadd.f32 %v3999_v0, %v805_v37 }
 0xd75   :  { %941 = vst.msk [vmem:[%s4282_s12 + $0xd0] sm:$0xff] %vm914_vm4, %v3001_v38  ;;  %3010 = vtanh.f32 %v875_v22 }
 0xd76   :  { %3012 = vtanh.f32 %v874_v46  ;;  %v2653_v5 = vpop.f32.mrb[34].mxu0 }
 0xd77   :  { %v3003_v17 = vpop.eup %3002  ;;  %v877_v59 = vadd.f32 %v2653_v5, %v4010_v11  ;;  %v815_v15 = vpop.f32.mrb[35].mxu0 }
 0xd78   :  { %v3005_v41 = vpop.eup %3004  ;;  %944 = vst.msk [vmem:[%s4282_s12 + $0xe8] sm:$0xff] %vm914_vm4, %v3003_v17  ;;  %v876_v0 = vadd.f32 %v4019_v31, %v815_v15 }
 0xd79   :  { %943 = vst.msk [vmem:[%s4282_s12 + $0xe0] sm:$0xff] %vm914_vm4, %v3005_v41  ;;  %3014 = vtanh.f32 %v877_v59 }
 0xd7a   :  { %3016 = vtanh.f32 %v876_v0 }
 0xd7b   :  { %v3007_v43 = vpop.eup %3006 }
 0xd7c   :  { %v3009_v7 = vpop.eup %3008  ;;  %946 = vst.msk [vmem:[%s4282_s12 + $0xf8] sm:$0xff] %vm914_vm4, %v3007_v43 }
 0xd7d   :  { %945 = vst.msk [vmem:[%s4282_s12 + $0xf0] sm:$0xff] %vm914_vm4, %v3009_v7 }
 0xd7f   :  { %v3011_v11 = vpop.eup %3010 }
 0xd80   :  { %v3013_v31 = vpop.eup %3012  ;;  %948 = vst.msk [vmem:[%s4282_s12 + $0x108] sm:$0xff] %vm914_vm4, %v3011_v11 }
 0xd81   :  { %947 = vst.msk [vmem:[%s4282_s12 + $0x100] sm:$0xff] %vm914_vm4, %v3013_v31 }
 0xd83   :  { %v3015_v52 = vpop.eup %3014 }
 0xd84   :  { %v4082_v32 = vpop.permute.xlu1 %2042  ;;  %v3017_v61 = vpop.eup %3016  ;;  %950 = vst.msk [vmem:[%s4282_s12 + $0x118] sm:$0xff] %vm914_vm4, %v3015_v52 }
 0xd85   :  { %2459 = vmatmul.mubr.msk.f32.vlgmr.msra.gmra.mrb[36].mxu0 %vm981_vm0, %v4082_v32  ;;  %949 = vst.msk [vmem:[%s4282_s12 + $0x110] sm:$0xff] %vm914_vm4, %v3017_v61  ;;  %s3082_s12 = smov [#allocation2]  }
 0xe58   :  { %v2112_v42 = vpop.f32.mrb[36].mxu0 }
 0xe59   :  { %v2117_v62 = vadd.f32 %v2112_v42, %v3423_v27  ;;  %v2114_v4 = vpop.f32.mrb[37].mxu0 }
 0xe5a   :  { %v2118_v50 = vadd.f32 %v2114_v4, %v3428_v10 }
 0xe5b   :  { %v2460_v34 = vmul.f32 -1.442695, %v2117_v62 }
 0xe5c   :  { %v2461_v27 = vmul.f32 -1.442695, %v2118_v50 }
 0xe5d   :  { %3018 = vpow2.f32 %v2460_v34 }
 0xe5e   :  { %3020 = vtanh.f32 %v2118_v50 }
 0xe67   :  { %v3019_v26 = vpop.eup %3018 }
 0xe68   :  { %v2122_v1 = vadd.f32 1.0, %v3019_v26  ;;  %v3021_v20 = vpop.eup %3020 }
 0xe6a   :  { %3022 = vrcp.f32 %v2122_v1 }
 0xe6b   :  { %3024 = vpow2.f32 %v2461_v27 }
 0xe74   :  { %v3023_v54 = vpop.eup %3022 }
 0xe75   :  { %v2133_v6 = vmul.f32 %v3023_v54, %v3021_v20  ;;  %v3025_v10 = vpop.eup %3024  ;;  %v2132_v63 = vmul.f32 %v3023_v54, %v3858_v51  ;;  %v2175_v51 = vpop.permute.xlu1 %2174 }
 0xe76   :  { %v2129_v21 = vadd.f32 1.0, %v3025_v10  ;;  %v4178_v9 = vsel %vm2146_vm5, %v4082_v32, %v2175_v51 }
 0xe77   :  { %2135 = vrot.lane.b32.xlu0 %v2133_v6, %s3079_s3  ;;  %v2233_v48 = vrot.slane %v4178_v9, 2  ;;  %v2249_v19 = vrot.slane %v4178_v9, 3 }
 0xe78   :  { %3026 = vrcp.f32 %v2129_v21 }
 0xe79   :  { %v2155_v35 = vpop.permute.xlu1 %2154 }
 0xe7b   :  { %2149 = vrot.lane.b32.xlu0 %v3861_v58, %s3080_s5 }
 0xe7d   :  { %v2194_v29 = vpop.permute.xlu1 %2193 }
 0xe7f   :  { %2181 = vrot.lane.b32.xlu0 %v3431_v44, %s3080_s5 }
 0xe81   :  { %v2165_v47 = vpop.permute.xlu1 %2164 }
 0xe82   :  { %v3027_v60 = vpop.eup %3026 }
 0xe83   :  { %2189 = vrot.lane.b32.xlu0 %v3861_v58, %s3081_s29 }
 0xe85   :  { %v2202_v49 = vpop.permute.xlu1 %2201 }
 0xe87   :  { %2169 = vrot.lane.b32.xlu0 %v3471_v39, %s3080_s5 }
 0xe8b   :  { %2159 = vrot.lane.b32.xlu0 %v3511_v14, %s3080_s5 }
 0xe8f   :  { %2197 = vrot.lane.b32.xlu0 %v3511_v14, %s3081_s29 }
 0xe93   :  { %2205 = vrot.lane.b32.xlu0 %v3471_v39, %s3081_s29 }
 0xee9   :  { %v2136_v8 = vpop.permute.xlu0 %2135 }
 0xeea   :  { %v2138_v58 = vadd.f32 %v2136_v8, %v2132_v63 }
 0xeec   :  { %3028 = vtanh.f32 %v2138_v58 }
 0xeed   :  { %v4174_v39 = vpop.permute.xlu0 %2149 }
 0xeee   :  { %v2152_v12 = vsel %vm2146_vm5, %v3455_v56, %v4174_v39 }
 0xef1   :  { %v2182_v14 = vpop.permute.xlu0 %2181 }
 0xef5   :  { %v2190_v23 = vpop.permute.xlu0 %2189 }
 0xef6   :  { %v3029_v28 = vpop.eup %3028  ;;  %v2192_v32 = vsel %vm2146_vm5, %v2175_v51, %v2190_v23 }
 0xef7   :  { %v2140_v13 = vmul.f32 %v3029_v28, %v3027_v60  ;;  %v2276_v56 = vrot.slane %v2192_v32, 7 }
 0xef9   :  { %2178 = vrot.lane.b32.xlu0 %v2140_v13, %s3079_s3  ;;  %2143 = vrot.lane.b32.xlu1 %v2140_v13, %s3080_s5  ;;  %v2170_v36 = vpop.permute.xlu0 %2169  ;;  %s2332_s3 = sshll.u32 %s3082_s12, 4  ;;  %s3083_s5 = smov [#allocation4]   ;;  %s4227_s3 = int_to_ptr.vmem [resolvable:$true] %s2332_s3 }
 0xefa   :  { %v2196_v22 = vsel %vm2146_vm5, %v2170_v36, %v2194_v29  ;;  %s3030_s19 = scalar_lea.vmem %s4227_s3, 256  ;;  %p3035_p1 = scmp.lt.s32.totalorder %s4227_s3, %s4227_s3 }
 0xefb   :  { %v2279_v15 = vrot.slane %v2196_v22, 6  ;;  %v2299_v41 = vrot.slane %v2196_v22, 7  ;;  %p3031_p0 = scmp.ne.s32.totalorder %s4227_s3, %s3030_s19  ;;  %p3036_p2 = scmp.lt.s32.totalorder %s3030_s19, %s3030_s19 }
 0xefd   :  { %2185 = vrot.lane.b32.xlu1 %v2140_v13, %s3081_s29  ;;  %v2160_v30 = vpop.permute.xlu0 %2159  ;;  %p3037_p3 = por %p3036_p2, %p3035_p1 }
 0xefe   :  { %v2162_v37 = vsel %vm2146_vm5, %v3495_v57, %v2160_v30  ;;  %v2204_v5 = vsel %vm2146_vm5, %v2160_v30, %v2202_v49 }
 0xeff   :  { %v2224_v0 = vrot.slane %v2162_v37, 5  ;;  %v2243_v57 = vrot.slane %v2162_v37, 6  ;;  %v2285_v52 = vrot.slane %v2204_v5, 4  ;;  %v2303_v61 = vrot.slane %v2204_v5, 5  ;;  %p3038_p4 = pnand %p3037_p3, %p3031_p0 }
 0xf01   :  { %2209 = vrot.lane.b32.xlu1 %v3451_v24, %s3081_s29  ;;  %v2198_v2 = vpop.permute.xlu0 %2197  ;;  %v2157_v24 = vsel %vm2146_vm5, %v3475_v40, %v2155_v35  ;;  %v2172_v40 = vsel %vm2146_vm5, %v3537_v18, %v2170_v36 }
 0xf02   :  { %v2221_v16 = vrot.slane %v2157_v24, 6  ;;  %v2241_v55 = vrot.slane %v2157_v24, 7  ;;  %v2230_v38 = vrot.slane %v2172_v40, 3  ;;  %v2247_v46 = vrot.slane %v2172_v40, 4 }
 0xf03   :  { %v2200_v17 = vsel %vm2146_vm5, %v2165_v47, %v2198_v2 }
 0xf04   :  { %v2282_v42 = vrot.slane %v2200_v17, 5  ;;  %v2301_v4 = vrot.slane %v2200_v17, 6 }
 0xf05   :  { %2213 = vrot.lane.b32.xlu1 %v3431_v44, %s3081_s29  ;;  %v2167_v44 = vsel %vm2146_vm5, %v3515_v3, %v2165_v47  ;;  %v2206_v25 = vpop.permute.xlu0 %2205  ;;  %v2218_v3 = vrot.slane %v2152_v12, 7  ;;  %s2344_s29 = sshll.u32 %s3083_s5, 4  ;;  %s2345_s29 = int_to_ptr.vmem [resolvable:$true] %s2344_s29 }
 0xf06   :  { %v2227_v33 = vrot.slane %v2167_v44, 4  ;;  %v2245_v53 = vrot.slane %v2167_v44, 5  ;;  %v2208_v50 = vsel %vm2146_vm5, %v2155_v35, %v2206_v25 }
 0xf07   :  { %v2288_v2 = vrot.slane %v2208_v50, 3  ;;  %v2305_v24 = vrot.slane %v2208_v50, 4 }
 0xf6b   :  { %v2144_v18 = vpop.permute.xlu1 %2143  ;;  %v2179_v59 = vpop.permute.xlu0 %2178 }
 0xf6c   :  { %v2147_v43 = vsel %vm2146_vm5, %v3435_v45, %v2144_v18  ;;  %v2184_v31 = vsel %vm2146_vm5, %v2179_v59, %v2182_v14 }
 0xf6d   :  { %v2239_v7 = vrot.slane %v2147_v43, 1  ;;  %v2253_v11 = vsel %vm1164_vm1, %v2147_v43, %v2218_v3  ;;  %v2236_v54 = vrot.slane %v2184_v31, 1  ;;  %v2251_v8 = vrot.slane %v2184_v31, 2 }
 0xf6e   :  { %v2255_v62 = vsel %vm2254_vm6, %v2253_v11, %v2221_v16 }
 0xf6f   :  { %v2257_v34 = vsel %vm2256_vm7, %v2255_v62, %v2224_v0  ;;  %v2266_v26 = vsel %vm1164_vm1, %v2239_v7, %v2152_v12  ;;  %v2186_v1 = vpop.permute.xlu1 %2185 }
 0xf70   :  { %v2259_v45 = vsel %vm2258_vm8, %v2257_v34, %v2227_v33  ;;  %v2267_v20 = vsel %vm2254_vm6, %v2266_v26, %v2241_v55  ;;  %v2188_v6 = vsel %vm2146_vm5, %v2182_v14, %v2186_v1 }
 0xf71   :  { %v2268_v27 = vsel %vm2256_vm7, %v2267_v20, %v2243_v57  ;;  %v2297_v10 = vrot.slane %v2188_v6, 1  ;;  %v2311_v21 = vsel %vm1164_vm1, %v2188_v6, %v2276_v56  ;;  %v2261_v63 = vsel %vm2260_vm9, %v2259_v45, %v2230_v38 }
 0xf72   :  { %v2312_v58 = vsel %vm2254_vm6, %v2311_v21, %v2279_v15  ;;  %v2263_v60 = vsel %vm2262_vm10, %v2261_v63, %v2233_v48  ;;  %v2269_v28 = vsel %vm2258_vm8, %v2268_v27, %v2245_v53 }
 0xf73   :  { %v2313_v13 = vsel %vm2256_vm7, %v2312_v58, %v2282_v42  ;;  %v2318_v14 = vsel %vm1164_vm1, %v2297_v10, %v2192_v32  ;;  %v2210_v51 = vpop.permute.xlu1 %2209  ;;  %v2265_v23 = vsel %vm2264_vm11, %v2263_v60, %v2236_v54  ;;  %v2270_v35 = vsel %vm2260_vm9, %v2269_v28, %v2247_v46 }
 0xf74   :  { %v2314_v36 = vsel %vm2258_vm8, %v2313_v13, %v2285_v52  ;;  %v2319_v29 = vsel %vm2254_vm6, %v2318_v14, %v2299_v41  ;;  %v2212_v30 = vsel %vm2146_vm5, %v4174_v39, %v2210_v51  ;;  %v2271_v47 = vsel %vm2262_vm10, %v2270_v35, %v2249_v19  ;;  %2273 = vst.msk [vmem:[#allocation2] sm:$0xff] %vm914_vm4, %v2265_v23 }
 0xf75   :  { %v2320_v44 = vsel %vm2256_vm7, %v2319_v29, %v2301_v4  ;;  %v2291_v48 = vrot.slane %v2212_v30, 2  ;;  %v2307_v12 = vrot.slane %v2212_v30, 3  ;;  %v2272_v39 = vsel %vm2264_vm11, %v2271_v47, %v2251_v8 }
 0xf76   :  { %v2321_v16 = vsel %vm2258_vm8, %v2320_v44, %v2303_v61  ;;  %v2315_v9 = vsel %vm2260_vm9, %v2314_v36, %v2288_v2  ;;  %2274 = vst.msk [vmem:[#allocation2 + $0x8] sm:$0xff] %vm914_vm4, %v2272_v39 }
 0xf77   :  { %v2322_v19 = vsel %vm2260_vm9, %v2321_v16, %v2305_v24  ;;  %v2214_v55 = vpop.permute.xlu1 %2213 }
 0xf78   :  { %v2216_v33 = vsel %vm2146_vm5, %v2144_v18, %v2214_v55 }
 0xf79   :  { %3041 = shalt.err (!%p3038_p4)
}
 0xf7a   :  { %s3042_s21 = scalar_lea.hbm %s4280_s10, 256 }
 0xf7b   :  { %p3043_p5 = scmp.ne.s32.totalorder %s4280_s10, %s3042_s21  ;;  %p3046_p6 = scmp.lt.u32.totalorder %s3042_s21, %s4280_s10 }
 0xf7d   :  { %p3048_p7 = pnand %p3046_p6, %p3043_p5 }
 0xf7f   :  { %3051 = shalt.err (!%p3048_p7)
}
 0xf80   :  { %s3084_s24 = smov 128   ;;  %s3085_s1 = smov 8   ;;  %v2294_v49 = vrot.slane %v2216_v33, 1  ;;  %v2309_v32 = vrot.slane %v2216_v33, 2  ;;  %v2316_v25 = vsel %vm2262_vm10, %v2315_v9, %v2291_v48  ;;  %v2323_v53 = vsel %vm2262_vm10, %v2322_v19, %v2307_v12 }
 0xf81   :  { %2338 = dma.vmem_to_hbm [thread:$0]  %s4227_s3, 256, %s4280_s10, [#allocation3], %s3084_s24, %s3084_s24, %s3085_s1  }
 0xf82   :  { %v2317_v40 = vsel %vm2264_vm11, %v2316_v25, %v2294_v49  ;;  %v2324_v3 = vsel %vm2264_vm11, %v2323_v53, %v2309_v32  ;;  %s3052_s27 = scalar_lea.vmem %s2345_s29, 256  ;;  %p3057_p9 = scmp.lt.s32.totalorder %s2345_s29, %s2345_s29 }
 0xf83   :  { %2325 = vst.msk [vmem:[#allocation4] sm:$0xff] %vm914_vm4, %v2317_v40  ;;  %2326 = vst.msk [vmem:[#allocation4 + $0x8] sm:$0xff] %vm914_vm4, %v2324_v3  ;;  %p3053_p8 = scmp.ne.s32.totalorder %s2345_s29, %s3052_s27  ;;  %p3058_p10 = scmp.lt.s32.totalorder %s3052_s27, %s3052_s27 }
 0xf85   :  { %p3059_p11 = por %p3058_p10, %p3057_p9 }
 0xf87   :  { %p3060_p12 = pnand %p3059_p11, %p3053_p8 }
 0xf89   :  { %3063 = shalt.err (!%p3060_p12)
}
 0xf8a   :  { %s3064_s0 = scalar_lea.hbm %s4281_s11, 256 }
 0xf8b   :  { %p3065_p13 = scmp.ne.s32.totalorder %s4281_s11, %s3064_s0  ;;  %p3068_p0 = scmp.lt.u32.totalorder %s3064_s0, %s4281_s11 }
 0xf8d   :  { %p3070_p1 = pnand %p3068_p0, %p3065_p13 }
 0xf8f   :  { %3073 = shalt.err (!%p3070_p1)
}
 0xf90   :  { %2350 = dma.vmem_to_hbm [thread:$0]  %s2345_s29, 256, %s4281_s11, [#allocation5], %s3084_s24, %s3084_s24, %s3085_s1  }
 0xf91   :  { %3074 = dma.done.wait [#allocation3], 256  }
 0xf92   :  { %3075 = vsyncadd [#allocation3], 4294967040 }
 0xf93   :  { %3076 = dma.done.wait [#allocation5], 256  }
 0xf94   :  { %3077 = vsyncadd [#allocation5], 4294967040 }
 0xf95   :  { %2361 = vsyncpa [#allocation3], 1 }
 0xf96   :  { %2362 = vsyncpa [#allocation5], 1 }

</bundles_post_ra>
